<compile_context>
chip_gen: v7x
topology: tpu7x:2x2x1
jax: 0.10.0
libtpu: 0.0.40
codegen_flags: <defaults>
</compile_context>

<pallas_src>
import functools

import jax
import jax.numpy as jnp
from jax.experimental import pallas as pl
from jax.experimental.pallas import tpu as pltpu


def _round_up(x, m):
    return (x + m - 1) // m * m


def _cdiv(a, b):
    return (a + b - 1) // b


def _layer_norm_rows(y_f32, gamma_f32, beta_f32, eps):
    mean = jnp.mean(y_f32, axis=-1, keepdims=True)
    centered = y_f32 - mean
    var = jnp.mean(centered * centered, axis=-1, keepdims=True)
    inv = jax.lax.rsqrt(var + eps)
    return centered * inv * gamma_f32 + beta_f32


def _kernel_resident(h_ref, res_ref, w_ref, b_ref, g_ref, beta_ref, o_ref, *, eps):
    # Single-K specialization: no accumulator scratch, no reduction grid axis.
    # h_ref:   (TM, I)  hidden_states row tile (native dtype)
    # res_ref: (TM, H)  residual (input_tensor) row tile
    # w_ref:   (I,  H)  full dense weight W^T, resident in VMEM
    # b/g/beta:(1,  H)  bias / LayerNorm gamma / beta
    y = jnp.dot(h_ref[...], w_ref[...], preferred_element_type=jnp.float32)
    y = y + b_ref[...].astype(jnp.float32) + res_ref[...].astype(jnp.float32)
    # TODO(synk): dropout is identity in eval mode (no RNG mask applied here).
    out = _layer_norm_rows(y, g_ref[...].astype(jnp.float32),
                           beta_ref[...].astype(jnp.float32), eps)
    o_ref[...] = out.astype(o_ref.dtype)


def _kernel_ktiled(h_ref, res_ref, w_ref, b_ref, g_ref, beta_ref,
                   o_ref, acc_ref, *, eps):
    # Fallback when W^T does not fit in VMEM: stream (tk, H) weight slabs into
    # a resident f32 accumulator.
    k = pl.program_id(1)

    @pl.when(k == 0)
    def _():
        # Fold bias + residual into the accumulator up front (off the epilogue
        # critical path; overlapped with the first weight DMA).
        acc_ref[...] = (res_ref[...].astype(jnp.float32)
                        + b_ref[...].astype(jnp.float32))

    acc_ref[...] += jnp.dot(h_ref[...], w_ref[...],
                            preferred_element_type=jnp.float32)

    @pl.when(k == pl.num_programs(1) - 1)
    def _():
        # TODO(synk): dropout is identity in eval mode (no RNG mask applied).
        out = _layer_norm_rows(acc_ref[...], g_ref[...].astype(jnp.float32),
                               beta_ref[...].astype(jnp.float32), eps)
        o_ref[...] = out.astype(o_ref.dtype)


def bert_generation_output(hidden_states, input_tensor, w_t, b, gamma, beta,
                           *, eps=1e-12, tm_max=256, tk_max=512,
                           cast_operands_to_bf16=False, force_ktiled=False):
    """hidden_states: [B,S,I], input_tensor: [B,S,H], w_t: [I,H] (= W.T).

    Dropout is treated as identity (eval mode).
    """
    B, S, I = hidden_states.shape
    H = input_tensor.shape[-1]
    M = B * S
    out_dtype = hidden_states.dtype

    if cast_operands_to_bf16 and hidden_states.dtype == jnp.float32:
        # v5e lever: bf16 operands into the MXU; accumulation & LN stay f32.
        hidden_states = hidden_states.astype(jnp.bfloat16)
        w_t = w_t.astype(jnp.bfloat16)

    act_bytes = jnp.dtype(hidden_states.dtype).itemsize
    res_bytes = jnp.dtype(input_tensor.dtype).itemsize
    w_bytes = jnp.dtype(w_t.dtype).itemsize
    out_bytes = jnp.dtype(out_dtype).itemsize
    small_vec_bytes = 3 * H * 4

    # VMEM budget: ~75% of physical capacity (leaves room for Mosaic scratch;
    # ~48 MiB on v7x, ~96 MiB on v5e/v6e).
    try:
        vmem_cap = int(pltpu.get_tpu_info().vmem_capacity_bytes)
    except Exception:
        vmem_cap = 64 << 20  # v7x-safe fallback
    vmem_budget = vmem_cap * 3 // 4

    # Row tile: MXU-filling, sublane aligned, and split into >=2 tiles when
    # possible so the "parallel" grid axis feeds both v7x TensorCores.  The
    # last tile may be partial (Pallas masks it) -- no jnp.pad of activations.
    row_align = 8 if act_bytes >= 4 else (16 if act_bytes == 2 else 32)
    if M <= 2 * tm_max:
        tm = min(tm_max, max(row_align, _round_up(_cdiv(M, 2), row_align)))
    else:
        tm = tm_max

    h2 = hidden_states.reshape(M, I)
    r2 = input_tensor.reshape(M, H)
    b2 = b.reshape(1, H)
    g2 = gamma.reshape(1, H)
    beta2 = beta.reshape(1, H)

    def resident_footprint(tm_):
        # Double-buffered per-step tiles; resident weight and the constant
        # bias/gamma/beta blocks are still allocated twice by the pipeliner
        # (fetched only once since their block index never changes).
        return (2 * (tm_ * I * act_bytes + tm_ * H * res_bytes
                     + tm_ * H * out_bytes)
                + 2 * I * H * w_bytes + 2 * small_vec_bytes)

    use_resident = (not force_ktiled) and resident_footprint(tm) <= vmem_budget
    # If only the activation tiles overflow, shrink tm and keep W^T resident.
    while (not force_ktiled and not use_resident and tm > row_align
           and 2 * I * H * w_bytes <= vmem_budget // 2):
        tm = max(row_align, _round_up(tm // 2, row_align))
        use_resident = resident_footprint(tm) <= vmem_budget

    if use_resident:
        num_i = _cdiv(M, tm)
        out = pl.pallas_call(
            functools.partial(_kernel_resident, eps=eps),
            out_shape=jax.ShapeDtypeStruct((M, H), out_dtype),
            grid_spec=pltpu.PrefetchScalarGridSpec(
                num_scalar_prefetch=0,
                grid=(num_i,),
                in_specs=[
                    pl.BlockSpec((tm, I), lambda i: (i, 0)),   # hidden rows (full K)
                    pl.BlockSpec((tm, H), lambda i: (i, 0)),   # residual rows
                    pl.BlockSpec((I, H), lambda i: (0, 0)),    # W^T resident in VMEM
                    pl.BlockSpec((1, H), lambda i: (0, 0)),    # bias
                    pl.BlockSpec((1, H), lambda i: (0, 0)),    # gamma
                    pl.BlockSpec((1, H), lambda i: (0, 0)),    # beta
                ],
                out_specs=pl.BlockSpec((tm, H), lambda i: (i, 0)),
            ),
            compiler_params=pltpu.CompilerParams(
                dimension_semantics=("parallel",),
                vmem_limit_bytes=int(vmem_budget)),
        )(h2, r2, w_t, b2, g2, beta2)
        return out.reshape(B, S, H)

    # ---------------- K-tiled fallback (W^T too large for VMEM) -------------
    I_128 = _round_up(I, 128)
    tk = 128
    for cand in (tk_max, 384, 256, 128):
        if 128 <= cand <= tk_max and cand <= I_128 and I_128 % cand == 0:
            tk = cand
            break
    if I_128 != I:
        # Zero-pad the reduction dim only (keeps the dot exact); at most 127
        # extra columns thanks to the divisor-based tk choice.
        h2 = jnp.pad(h2, ((0, 0), (0, I_128 - I)))
        w_t = jnp.pad(w_t, ((0, I_128 - I), (0, 0)))
    num_k = I_128 // tk

    def ktiled_footprint(tm_):
        return (2 * (tm_ * tk * act_bytes + tm_ * H * res_bytes
                     + tk * H * w_bytes + tm_ * H * out_bytes)
                + 2 * small_vec_bytes + tm_ * H * 4)

    while ktiled_footprint(tm) > vmem_budget and tm > row_align:
        tm = max(row_align, _round_up(tm // 2, row_align))
    num_i = _cdiv(M, tm)

    out = pl.pallas_call(
        functools.partial(_kernel_ktiled, eps=eps),
        out_shape=jax.ShapeDtypeStruct((M, H), out_dtype),
        grid_spec=pltpu.PrefetchScalarGridSpec(
            num_scalar_prefetch=0,
            grid=(num_i, num_k),
            in_specs=[
                pl.BlockSpec((tm, tk), lambda i, k: (i, k)),   # hidden rows/k
                pl.BlockSpec((tm, H), lambda i, k: (i, 0)),    # residual rows
                pl.BlockSpec((tk, H), lambda i, k: (k, 0)),    # W^T k-slab
                pl.BlockSpec((1, H), lambda i, k: (0, 0)),     # bias
                pl.BlockSpec((1, H), lambda i, k: (0, 0)),     # gamma
                pl.BlockSpec((1, H), lambda i, k: (0, 0)),     # beta
            ],
            out_specs=pl.BlockSpec((tm, H), lambda i, k: (i, 0)),
            scratch_shapes=[pltpu.VMEM((tm, H), jnp.float32)],
        ),
        compiler_params=pltpu.CompilerParams(
            dimension_semantics=("parallel", "arbitrary"),
            vmem_limit_bytes=int(vmem_budget)),
    )(h2, r2, w_t, b2, g2, beta2)
    return out.reshape(B, S, H)


def reference(hidden_states, input_tensor, w_t, b, gamma, beta, eps=1e-12):
    hs = hidden_states.astype(jnp.float32)
    it = input_tensor.astype(jnp.float32)
    y = jnp.einsum("bsi,ih->bsh", hs, w_t.astype(jnp.float32)) + b
    y = y + it
    mean = jnp.mean(y, axis=-1, keepdims=True)
    var = jnp.mean((y - mean) ** 2, axis=-1, keepdims=True)
    return (y - mean) * jax.lax.rsqrt(var + eps) * gamma + beta


if __name__ == "__main__":
    eps = 1e-12
    key = jax.random.PRNGKey(0)
    k_h, k_r, k_w, k_b, k_g, k_be = jax.random.split(key, 6)

    # --- Main config (intermediate=512, hidden=256, batch=2, seq=128) -------
    B, S, I, H = 2, 128, 512, 256
    hidden_states = jax.random.normal(k_h, (B, S, I), dtype=jnp.float32)
    input_tensor = jax.random.normal(k_r, (B, S, H), dtype=jnp.float32)
    w_t = jax.random.normal(k_w, (I, H), dtype=jnp.float32) * (1.0 / jnp.sqrt(I))
    b = jax.random.normal(k_b, (H,), dtype=jnp.float32) * 0.01
    gamma = 1.0 + 0.01 * jax.random.normal(k_g, (H,), dtype=jnp.float32)
    beta = 0.01 * jax.random.normal(k_be, (H,), dtype=jnp.float32)

    ref = reference(hidden_states, input_tensor, w_t, b, gamma, beta, eps=eps)

    # f32, resident-weight fast path
    out_f32 = bert_generation_output(hidden_states, input_tensor, w_t, b,
                                     gamma, beta, eps=eps)
    out_f32 = jax.block_until_ready(out_f32)
    assert out_f32.shape == (B, S, H)
    assert jnp.allclose(out_f32, ref, atol=2e-4, rtol=2e-4), "f32 mismatch"

    # bf16 activations/weights into the MXU (f32 accumulation + f32 LN inside)
    out_bf16 = bert_generation_output(
        hidden_states.astype(jnp.bfloat16), input_tensor.astype(jnp.bfloat16),
        w_t.astype(jnp.bfloat16), b, gamma, beta, eps=eps)
    out_bf16 = jax.block_until_ready(out_bf16)
    assert out_bf16.shape == (B, S, H)
    assert jnp.allclose(out_bf16.astype(jnp.float32), ref,
                        atol=5e-2, rtol=5e-2), "bf16 mismatch"

    # v5e-style bf16-operand cast of an f32 model (f32 output / LN preserved)
    out_cast = bert_generation_output(hidden_states, input_tensor, w_t, b,
                                      gamma, beta, eps=eps,
                                      cast_operands_to_bf16=True)
    out_cast = jax.block_until_ready(out_cast)
    assert out_cast.dtype == jnp.float32
    assert jnp.allclose(out_cast, ref, atol=5e-2, rtol=5e-2), "cast mismatch"

    # Odd shapes: partial boundary row tile (no wrapper pad of activations)
    B2, S2, I2, H2 = 2, 77, 384, 256
    hs2 = jax.random.normal(k_h, (B2, S2, I2), dtype=jnp.float32)
    it2 = jax.random.normal(k_r, (B2, S2, H2), dtype=jnp.float32)
    w2 = jax.random.normal(k_w, (I2, H2), dtype=jnp.float32) * (1.0 / jnp.sqrt(I2))
    b2_ = jax.random.normal(k_b, (H2,), dtype=jnp.float32) * 0.01
    g2_ = 1.0 + 0.01 * jax.random.normal(k_g, (H2,), dtype=jnp.float32)
    be2 = 0.01 * jax.random.normal(k_be, (H2,), dtype=jnp.float32)
    out2 = bert_generation_output(hs2, it2, w2, b2_, g2_, be2, eps=eps)
    out2 = jax.block_until_ready(out2)
    ref2 = reference(hs2, it2, w2, b2_, g2_, be2, eps=eps)
    assert out2.shape == (B2, S2, H2)
    assert jnp.allclose(out2, ref2, atol=2e-4, rtol=2e-4), "odd-shape mismatch"

    # Exercise the K-tiled fallback (streamed weights, bias+residual folded
    # into the accumulator at k==0).
    out_kt = bert_generation_output(hidden_states, input_tensor, w_t, b,
                                    gamma, beta, eps=eps,
                                    force_ktiled=True, tk_max=128)
    out_kt = jax.block_until_ready(out_kt)
    assert jnp.allclose(out_kt, ref, atol=2e-4, rtol=2e-4), "ktiled mismatch"

    print("KERNEL_OK")
</pallas_src>

<mosaic_0001>
module attributes {stable_mosaic.version = 11 : i64} {
  func.func @_kernel_resident(%arg0: i32, %arg1: memref<128x512xf32, #tpu.memory_space<vmem>>, %arg2: memref<128x256xf32, #tpu.memory_space<vmem>>, %arg3: memref<512x256xf32, #tpu.memory_space<vmem>>, %arg4: memref<1x256xf32, #tpu.memory_space<vmem>>, %arg5: memref<1x256xf32, #tpu.memory_space<vmem>>, %arg6: memref<1x256xf32, #tpu.memory_space<vmem>>, %arg7: memref<128x256xf32, #tpu.memory_space<vmem>>) attributes {dimension_semantics = [#tpu.dimension_semantics<parallel>], iteration_bounds = array<i64: 2>, scalar_prefetch = 0 : i64, scratch_operands = 0 : i64, tpu.core_type = #tpu.core_type<tc>, window_params = [{transform_indices = @transform_0, window_bounds = array<i64: 128, 512>}, {transform_indices = @transform_1, window_bounds = array<i64: 128, 256>}, {pipeline_mode = #tpu.pipeline_mode<synchronous>, transform_indices = @transform_2, window_bounds = array<i64: 512, 256>}, {pipeline_mode = #tpu.pipeline_mode<synchronous>, transform_indices = @transform_3, window_bounds = array<i64: 1, 256>}, {pipeline_mode = #tpu.pipeline_mode<synchronous>, transform_indices = @transform_4, window_bounds = array<i64: 1, 256>}, {pipeline_mode = #tpu.pipeline_mode<synchronous>, transform_indices = @transform_5, window_bounds = array<i64: 1, 256>}, {transform_indices = @transform_6, window_bounds = array<i64: 128, 256>}]} {
    %c0 = arith.constant 0 : index
    %c0_0 = arith.constant 0 : index
    %0 = vector.load %arg1[%c0, %c0_0] : memref<128x512xf32, #tpu.memory_space<vmem>>, vector<128x512xf32>
    %c0_1 = arith.constant 0 : index
    %c0_2 = arith.constant 0 : index
    %1 = vector.load %arg3[%c0_1, %c0_2] : memref<512x256xf32, #tpu.memory_space<vmem>>, vector<512x256xf32>
    %cst = arith.constant dense<0.000000e+00> : vector<128x256xf32>
    %2 = tpu.matmul %0, %1, %cst {dimension_numbers = #tpu.dot_dimension_numbers<[1], [0], [0], [1], [0, 0, 1, 1], [], []>} : vector<128x512xf32>, vector<512x256xf32>, vector<128x256xf32> -> vector<128x256xf32>
    %c0_3 = arith.constant 0 : index
    %c0_4 = arith.constant 0 : index
    %3 = vector.load %arg4[%c0_3, %c0_4] : memref<1x256xf32, #tpu.memory_space<vmem>>, vector<1x256xf32>
    %4 = vector.broadcast %3 : vector<1x256xf32> to vector<128x256xf32>
    %5 = arith.addf %2, %4 : vector<128x256xf32>
    %c0_5 = arith.constant 0 : index
    %c0_6 = arith.constant 0 : index
    %6 = vector.load %arg2[%c0_5, %c0_6] : memref<128x256xf32, #tpu.memory_space<vmem>>, vector<128x256xf32>
    %7 = arith.addf %5, %6 : vector<128x256xf32>
    %c0_7 = arith.constant 0 : index
    %c0_8 = arith.constant 0 : index
    %8 = vector.load %arg5[%c0_7, %c0_8] : memref<1x256xf32, #tpu.memory_space<vmem>>, vector<1x256xf32>
    %c0_9 = arith.constant 0 : index
    %c0_10 = arith.constant 0 : index
    %9 = vector.load %arg6[%c0_9, %c0_10] : memref<1x256xf32, #tpu.memory_space<vmem>>, vector<1x256xf32>
    %cst_11 = arith.constant dense<0.000000e+00> : vector<128xf32>
    %10 = vector.multi_reduction <add>, %7, %cst_11 [1] : vector<128x256xf32> to vector<128xf32>
    %11 = vector.shape_cast %10 : vector<128xf32> to vector<128x1xf32>
    %cst_12 = arith.constant 2.560000e+02 : f32
    %12 = vector.broadcast %cst_12 : f32 to vector<128x1xf32>
    %13 = arith.divf %11, %12 : vector<128x1xf32>
    %14 = vector.broadcast %13 : vector<128x1xf32> to vector<128x256xf32>
    %15 = arith.subf %7, %14 : vector<128x256xf32>
    %16 = arith.mulf %15, %15 : vector<128x256xf32>
    %cst_13 = arith.constant dense<0.000000e+00> : vector<128xf32>
    %17 = vector.multi_reduction <add>, %16, %cst_13 [1] : vector<128x256xf32> to vector<128xf32>
    %18 = vector.shape_cast %17 : vector<128xf32> to vector<128x1xf32>
    %cst_14 = arith.constant 2.560000e+02 : f32
    %19 = vector.broadcast %cst_14 : f32 to vector<128x1xf32>
    %20 = arith.divf %18, %19 : vector<128x1xf32>
    %cst_15 = arith.constant 9.99999996E-13 : f32
    %21 = vector.broadcast %cst_15 : f32 to vector<128x1xf32>
    %22 = arith.addf %20, %21 : vector<128x1xf32>
    %23 = math.rsqrt %22 : vector<128x1xf32>
    %24 = vector.broadcast %23 : vector<128x1xf32> to vector<128x256xf32>
    %25 = arith.mulf %15, %24 : vector<128x256xf32>
    %26 = vector.broadcast %8 : vector<1x256xf32> to vector<128x256xf32>
    %27 = arith.mulf %25, %26 : vector<128x256xf32>
    %28 = vector.broadcast %9 : vector<1x256xf32> to vector<128x256xf32>
    %29 = arith.addf %27, %28 : vector<128x256xf32>
    %c0_16 = arith.constant 0 : index
    %c0_17 = arith.constant 0 : index
    %30 = vector.load %arg7[%c0_16, %c0_17] : memref<128x256xf32, #tpu.memory_space<vmem>>, vector<128x256xf32>
    tpu.vector_store %arg7[%c0_16, %c0_17], %29 {strides = array<i32>} : memref<128x256xf32, #tpu.memory_space<vmem>>, vector<128x256xf32>,
    return
  }
  func.func @transform_0(%arg0: i32) -> (i32, i32) {
    %c0_i32 = arith.constant 0 : i32
    %c0_i32_0 = arith.constant 0 : i32
    return %arg0, %c0_i32 : i32, i32
  }
  func.func @transform_1(%arg0: i32) -> (i32, i32) {
    %c0_i32 = arith.constant 0 : i32
    %c0_i32_0 = arith.constant 0 : i32
    return %arg0, %c0_i32 : i32, i32
  }
  func.func @transform_2(%arg0: i32) -> (i32, i32) {
    %c0_i32 = arith.constant 0 : i32
    %c0_i32_0 = arith.constant 0 : i32
    %c0_i32_1 = arith.constant 0 : i32
    return %c0_i32, %c0_i32_0 : i32, i32
  }
  func.func @transform_3(%arg0: i32) -> (i32, i32) {
    %c0_i32 = arith.constant 0 : i32
    %c0_i32_0 = arith.constant 0 : i32
    %c0_i32_1 = arith.constant 0 : i32
    return %c0_i32, %c0_i32_0 : i32, i32
  }
  func.func @transform_4(%arg0: i32) -> (i32, i32) {
    %c0_i32 = arith.constant 0 : i32
    %c0_i32_0 = arith.constant 0 : i32
    %c0_i32_1 = arith.constant 0 : i32
    return %c0_i32, %c0_i32_0 : i32, i32
  }
  func.func @transform_5(%arg0: i32) -> (i32, i32) {
    %c0_i32 = arith.constant 0 : i32
    %c0_i32_0 = arith.constant 0 : i32
    %c0_i32_1 = arith.constant 0 : i32
    return %c0_i32, %c0_i32_0 : i32, i32
  }
  func.func @transform_6(%arg0: i32) -> (i32, i32) {
    %c0_i32 = arith.constant 0 : i32
    %c0_i32_0 = arith.constant 0 : i32
    return %arg0, %c0_i32 : i32, i32
  }
}

</mosaic_0001>

<bundles_post_ra>
// kernel: tpu_custom_call.1
= control target key start
LH: loop header
LB: loop body
LE: loop exit
PB: predicated region body
PF: predicated region fallthrough
CT: control target
= control target key end

     0   :  { %s2752_s0 = inlined_call_operand.hbm [shape: f32[256,512], index: 0, kind: input, shape index: {}]   ;;  %s2753_s1 = inlined_call_operand.hbm [shape: f32[256,256], index: 1, kind: input, shape index: {}]   ;;  %s2754_s2 = inlined_call_operand.hbm [shape: f32[512,256], index: 2, kind: input, shape index: {}]   ;;  %s2755_s3 = inlined_call_operand.vmem [shape: f32[1,256], index: 3, kind: input, shape index: {}]   ;;  %s2756_s4 = inlined_call_operand.vmem [shape: f32[1,256], index: 4, kind: input, shape index: {}]   ;;  %s2757_s5 = inlined_call_operand.vmem [shape: f32[1,256], index: 5, kind: input, shape index: {}]   ;;  %s2758_s6 = inlined_call_operand.hbm [shape: f32[256,256], index: 6, kind: output, shape index: {}]  }
   0x1   :  { %2765 = sst [smem:[#allocation15_spill]] %s2752_s0 }
   0x2   :  { %2766 = sst [smem:[#allocation16_spill]] %s2754_s2 }
   0x3   :  { %11 = vsyncpa [#allocation3], 0 }
   0x4   :  { %13 = vsyncpa [#allocation3 + $0x1], 0 }
   0x5   :  { %14 = vsyncpa [#allocation6], 0 }
   0x6   :  { %16 = vsyncpa [#allocation6 + $0x1], 0 }
   0x7   :  { %17 = vsyncpa [#allocation4], 0 }
   0x8   :  { %19 = vsyncpa [#allocation4 + $0x1], 0  ;;  %s1946_s21 = smov 0   ;;  %s1948_s22 = smov 0  }
   0x9   :  { %s1950_s23 = smov 0   ;;  %s1952_s24 = smov 0  }
   0xa LB: > { %2767 = sst [smem:[#allocation13_spill]] %s1895_s23  ;;  %s1967_s25 = sadd.s32 4294967295, %s1899_s24   ;;  %s1899_s24 = sphi %s1952_s24, %s2791_s24   ;;  %s1895_s23 = sphi %s1950_s23, %s2790_s23   ;;  %s1891_s22 = sphi %s1948_s22, %s2789_s22   ;;  %s1887_s21 = sphi %s1946_s21, %s2788_s21  }
   0xb   : > { %s1416_s26 = sadd.s32 4294967294, %s1899_s24   ;;  %p45_p0 = scmp.ne.s32.totalorder %s1891_s22, %s1887_s21 }
   0xc   : > { %p2759_p1 = scmp.eq.s32.totalorder %s1967_s25, 0  ;;  %p185_p3 = scmp.eq.s32.totalorder %s1416_s26, 1 }
   0xd   : > { %p1417_p5 = scmp.ge.s32.totalorder %s1899_s24, 1  ;;  %p192_p7 = scmp.lt.s32.totalorder %s1899_s24, 3 }
   0xe   : > { %p1976_p4 = por %p2759_p1, %p45_p0  ;;  %p1981_p6 = por %p185_p3, %p45_p0 }
   0xf   : > { %p1986_p8 = pnand %p1417_p5, %p192_p7  ;;  %s1901_s30 = smov [#allocation7]  }
  0x10   : > { %s2768_s27 = scalar_select %p1976_p4, 1, 0 }
  0x11   : > { %s2769_s28 = scalar_select %p1981_p6, 1, 0 }
  0x12   : > { %s2770_s29 = scalar_select %p1986_p8, 1, 0 }
  0x13   : > { %s204_s7 = sshll.u32 %s1901_s30, 4  ;;  %p1647_p9 = pneg %p1986_p8  ;;  %s1990_s7 = int_to_ptr.vmem [resolvable:$true] %s204_s7 }
  0x14   : > { %s2002_s9 = sadd.s32 1, %s1899_s24   ;;  %s32_s10 = sadd.s32 1, %s1895_s23 }
  0x15   : > { %p1997_p11 = pnand %p1647_p9, %p2759_p1  ;;  %s29_s11 = ssub.s32 %s1899_s24, %s2002_s9 }
  0x16   : > { %s2772_s2 = sld [smem:[#allocation16_spill]] }
  0x17   : > { %p1739_p13 = pneg %p1997_p11 }
  0x1c   : > { %s1737_s14 = scalar_lea.hbm %s2772_s2, 16384 }
  0x1d   : > { %p1738_p12 = scmp.ne.s32.totalorder %s2772_s2, %s1737_s14  ;;  %p1744_p5 = scmp.lt.u32.totalorder %s1737_s14, %s2772_s2 }
  0x1f   : > { %p1740_p0 = pnand %p1739_p13, %p1738_p12 }
  0x21   : > { %p1741_p3 = pneg %p1740_p0 }
  0x23   : > { %p1746_p7 = pnand %p1744_p5, %p1741_p3 }
  0x25   : > { %1749 = shalt.err (!%p1746_p7)
}
  0x26   : > { %s1750_s19 = scalar_lea.vmem %s1990_s7, 16384  ;;  %p1758_p2 = scmp.lt.s32.totalorder %s1990_s7, %s1990_s7 }
  0x27   : > { %p1751_p9 = scmp.ne.s32.totalorder %s1990_s7, %s1750_s19  ;;  %p1759_p6 = scmp.lt.s32.totalorder %s1750_s19, %s1750_s19 }
  0x29   : > { %p1753_p10 = pnand %p1751_p9, %p1739_p13  ;;  %p1760_p4 = por %p1759_p6, %p1758_p2 }
  0x2b   : > { %p1754_p1 = pneg %p1753_p10 }
  0x2d   : > { %p1761_p8 = pnand %p1760_p4, %p1754_p1 }
  0x2f   : > { %1764 = shalt.err (!%p1761_p8)
}
  0x30   : > { %s2762_s20 = smov 256   ;;  %s2763_s26 = smov 16  }
  0x31   : > { %1650 = dma.hbm_to_vmem [thread:$0]  (!%p1997_p11), %s2772_s2, 16384, %s1990_s7, [#allocation6], %s2762_s20, %s2762_s20, %s2763_s26  }
  0x32   : > { %p30_p1 = scmp.eq.s32.totalorder %s29_s11, 0  ;;  %p39_p2 = scmp.ne.s32.totalorder %s1895_s23, %s1891_s22 }
  0x33   : > { %p40_p4 = scmp.eq.s32.totalorder %s1899_s24, 0  ;;  %p1663_p6 = scmp.lt.s32.totalorder %s1899_s24, 2 }
  0x34   : > { %s2036_s13 = scalar_select %p30_p1, %s1895_s23, %s32_s10  }
  0x35   : > { %p41_p8 = por %p40_p4, %p39_p2  ;;  %p2774_p10 = scmp.eq.s32.totalorder %s1967_s25, 1 }
  0x36   : > { %2773 = sst [smem:[#allocation14_spill]] %s2036_s13  ;;  %s2045_s8 = sand.u32 1, %s1895_s23  }
  0x37   : > { %p2040_p12 = por %p2774_p10, %p39_p2  ;;  %s1440_s15 = sshll.u32 %s1899_s24, 13 }
  0x38   : > { %s1420_s16 = sshll.u32 %s2045_s8, 9  ;;  %s2776_s0 = sld [smem:[#allocation15_spill]] }
  0x39   : > { %s231_s10 = scalar_lea.vmem [#allocation2], %s1420_s16  ;;  %p2054_p11 = pnand %p1663_p6, %p41_p8 }
  0x3a   : > { %s239_s18 = sshll.u32 %s231_s10, 4  ;;  %s228_s30 = scalar_lea.sflag [#allocation3], %s2045_s8  ;;  %s2058_s18 = int_to_ptr.vmem [resolvable:$true] %s239_s18 }
  0x3b   : > { %p1767_p0 = pneg %p2054_p11 }
  0x3e   : > { %s2052_s11 = scalar_lea.hbm %s2776_s0, %s1440_s15  ;;  %s1770_s17 = scalar_lea.hbm %s2776_s0, 16384 }
  0x3f   : > { %s1765_s12 = scalar_lea.hbm %s2052_s11, 8192  ;;  %p1771_p7 = scmp.lt.u32.totalorder %s2052_s11, %s2776_s0 }
  0x40   : > { %p1766_p13 = scmp.ne.s32.totalorder %s2052_s11, %s1765_s12  ;;  %p1772_p9 = scmp.lt.u32.totalorder %s1770_s17, %s1765_s12 }
  0x41   : > { %p1774_p2 = scmp.lt.u32.totalorder %s1765_s12, %s2052_s11 }
  0x42   : > { %p1768_p3 = pnand %p1767_p0, %p1766_p13  ;;  %p1773_p1 = por %p1772_p9, %p1771_p7 }
  0x44   : > { %p1769_p5 = pneg %p1768_p3  ;;  %p1775_p4 = por %p1774_p2, %p1773_p1 }
  0x46   : > { %p1776_p6 = pnand %p1775_p4, %p1769_p5 }
  0x48   : > { %1779 = shalt.err (!%p1776_p6)
}
  0x49   : > { %s1780_s20 = scalar_lea.vmem %s2058_s18, 8192  ;;  %s1904_s15 = smov [#allocation2]  }
  0x4a   : > { %p1781_p8 = scmp.ne.s32.totalorder %s2058_s18, %s1780_s20  ;;  %s1785_s16 = sshll.u32 %s1904_s15, 4  ;;  %s1786_s16 = int_to_ptr.vmem [resolvable:$false] %s1785_s16 }
  0x4b   : > { %s1787_s7 = scalar_lea.vmem %s1786_s16, 16384  ;;  %p1788_p3 = scmp.lt.s32.totalorder %s2058_s18, %s1786_s16 }
  0x4c   : > { %p1783_p10 = pnand %p1781_p8, %p1767_p0  ;;  %p1789_p7 = scmp.lt.s32.totalorder %s1787_s7, %s1780_s20 }
  0x4e   : > { %p1784_p13 = pneg %p1783_p10  ;;  %p1790_p9 = por %p1789_p7, %p1788_p3 }
  0x50   : > { %p1791_p1 = pnand %p1790_p9, %p1784_p13 }
  0x52   : > { %1794 = shalt.err (!%p1791_p1)
}
  0x53   : > { %s1905_s12 = smov 512   ;;  %s1906_s17 = smov 32  }
  0x54   : > { %1654 = dma.hbm_to_vmem [thread:$0]  (!%p2054_p11), %s2052_s11, 8192, %s2058_s18, %s228_s30, %s1905_s12, %s1905_s12, %s1906_s17  }
  0x55   : > { %s249_s10 = sand.u32 1, %s1899_s24   ;;  %s1424_s15 = sshll.u32 %s2045_s8, 8 }
  0x56   : > { %s1442_s16 = sshll.u32 %s1899_s24, 12  ;;  %s253_s20 = scalar_lea.vmem [#allocation5], %s1424_s15 }
  0x57   : > { %s261_s7 = sshll.u32 %s253_s20, 4  ;;  %s2094_s2 = scalar_lea.hbm %s2753_s1, %s1442_s16  ;;  %s2096_s7 = int_to_ptr.vmem [resolvable:$true] %s261_s7 }
  0x58   : > { %s2098_s13 = scalar_lea.sflag [#allocation6], %s249_s10  ;;  %s1795_s23 = scalar_lea.hbm %s2094_s2, 4096 }
  0x59   : > { %p1796_p5 = scmp.ne.s32.totalorder %s2094_s2, %s1795_s23  ;;  %s1800_s0 = scalar_lea.hbm %s2753_s1, 8192 }
  0x5a   : > { %p1801_p6 = scmp.lt.u32.totalorder %s2094_s2, %s2753_s1  ;;  %p1802_p8 = scmp.lt.u32.totalorder %s1800_s0, %s1795_s23 }
  0x5b   : > { %p1798_p2 = pnand %p1796_p5, %p1767_p0  ;;  %p1804_p13 = scmp.lt.u32.totalorder %s1795_s23, %s2094_s2 }
  0x5c   : > { %p1803_p10 = por %p1802_p8, %p1801_p6 }
  0x5d   : > { %p1799_p4 = pneg %p1798_p2 }
  0x5e   : > { %p1805_p3 = por %p1804_p13, %p1803_p10 }
  0x60   : > { %p1806_p7 = pnand %p1805_p3, %p1799_p4 }
  0x62   : > { %1809 = shalt.err (!%p1806_p7)
}
  0x63   : > { %s1810_s30 = scalar_lea.vmem %s2096_s7, 4096  ;;  %s1907_s12 = smov [#allocation5]  }
  0x64   : > { %p1811_p9 = scmp.ne.s32.totalorder %s2096_s7, %s1810_s30  ;;  %s1815_s17 = sshll.u32 %s1907_s12, 4  ;;  %s1816_s17 = int_to_ptr.vmem [resolvable:$false] %s1815_s17 }
  0x65   : > { %s1817_s10 = scalar_lea.vmem %s1816_s17, 8192  ;;  %p1818_p2 = scmp.lt.s32.totalorder %s2096_s7, %s1816_s17 }
  0x66   : > { %p1813_p1 = pnand %p1811_p9, %p1767_p0  ;;  %p1819_p6 = scmp.lt.s32.totalorder %s1817_s10, %s1810_s30 }
  0x68   : > { %p1814_p5 = pneg %p1813_p1  ;;  %p1820_p8 = por %p1819_p6, %p1818_p2 }
  0x6a   : > { %p1821_p10 = pnand %p1820_p8, %p1814_p5 }
  0x6c   : > { %1824 = shalt.err (!%p1821_p10)
}
  0x6d   : > { %s2778_s23 = smov 16   ;;  %s2779_s15 = smov 256  }
  0x6e   : > { %1657 = dma.hbm_to_vmem [thread:$0]  (!%p2054_p11), %s2094_s2, 4096, %s2096_s7, %s2098_s13, %s2779_s15, %s2779_s15, %s2778_s23  }
  0x6f   : > { %p2780_p0 = scmp.ne.s32.totalorder %s2770_s29, 0 }
  0x70   : > { %s2130_s16 = sand.u32 (!%p2780_p0), 1, %s1891_s22   ;;  %p2781_p4 = scmp.ne.s32.totalorder (!%p2780_p0), %s2768_s27, 0 }
  0x71   : > { %273 = sbr.rel (%p2780_p0) target bundleno = 803 (0x323), region = 44  ;;  %s1429_s20 = sshll.u32 (!%p2780_p0), %s2130_s16, 9 }
  0x72   : > { %s276_s8 = scalar_lea.sflag (!%p2780_p0), [#allocation3], %s2130_s16  ;;  %s2134_s11 = scalar_lea.vmem (!%p2780_p0), [#allocation2], %s1429_s20 }
  0x78   : > { %1870 = dma.done.wait (%p2781_p4), %s276_s8, 8192  }
  0x79   : > { %1872 = vsyncadd (%p2781_p4), %s276_s8, 4294959104  ;;  %s284_s2 = sand.u32 1, %s1967_s25   ;;  %s1430_s29 = sshll.u32 %s2130_s16, 8 }
  0x7a   : > { %s285_s13 = scalar_lea.sflag [#allocation6], %s284_s2  ;;  %s2144_s19 = scalar_lea.vmem [#allocation5], %s1430_s29 }
  0x7b   : > { %1874 = dma.done.wait (%p2781_p4), %s285_s13, 4096  }
  0x7c   : > { %1876 = vsyncadd (%p2781_p4), %s285_s13, 4294963200  ;;  %p2782_p11 = scmp.eq.s32.totalorder %s1967_s25, 0 }
  0x7e   : > { %1878 = dma.done.wait (%p2782_p11), [#allocation6], 16384   ;;  %p2783_p13 = pmov %p2782_p11 }
  0x7f   : > { %v394_v0 = vld [vmem:[#allocation7 + $0x8] sm:$0xff]  ;;  %v396_v1 = vld [vmem:[#allocation7 + $0x18] sm:$0xff]  ;;  %v393_v2 = vld [vmem:[#allocation7] sm:$0xff]  ;;  %s2579_s12 = scalar_lea.vmem [#allocation8], %s1430_s29  ;;  %s1444_s17 = sshll.u32 %s1967_s25, 12 }
  0x80   : > { %1880 = vsyncadd (%p2783_p13), [#allocation6], 4294950912  ;;  %v1445_v3 = vpack.c.bf16 %v396_v1, %v394_v0  ;;  %v395_v4 = vld [vmem:[#allocation7 + $0x10] sm:$0xff]  ;;  %v458_v5 = vld [vmem:[#allocation7 + $0x208] sm:$0xff]  ;;  %s1311_s10 = sshll.u32 %s2579_s12, 4  ;;  %s2702_s20 = scalar_lea.hbm %s2758_s6, %s1444_s17  ;;  %s2704_s10 = int_to_ptr.vmem [resolvable:$true] %s1311_s10 }
  0x81   : > { %v460_v6 = vld [vmem:[#allocation7 + $0x218] sm:$0xff]  ;;  %v1447_v7 = vpack.c.bf16 %v395_v4, %v393_v2  ;;  %v457_v9 = vld [vmem:[#allocation7 + $0x200] sm:$0xff]  ;;  %v459_v10 = vld [vmem:[#allocation7 + $0x210] sm:$0xff]  ;;  %s1297_s25 = scalar_lea.sflag [#allocation4], %s2130_s16  ;;  %s1825_s8 = scalar_lea.vmem %s2704_s10, 4096 }
  0x82   : > { %v1509_v8 = vpack.c.bf16 %v460_v6, %v458_v5  ;;  %v398_v11 = vld [vmem:[#allocation7 + $0x28] sm:$0xff]  ;;  %1446 = vmatprep.subr.bf16.mxu1 %v1445_v3  ;;  %v1511_v12 = vpack.c.bf16 %v459_v10, %v457_v9  ;;  %v400_v13 = vld [vmem:[#allocation7 + $0x38] sm:$0xff]  ;;  %v397_v14 = vld [vmem:[#allocation7 + $0x20] sm:$0xff]  ;;  %p1826_p3 = scmp.ne.s32.totalorder %s2704_s10, %s1825_s8 }
  0x83   : > { %v399_v15 = vld [vmem:[#allocation7 + $0x30] sm:$0xff]  ;;  %1448 = vmatpush1.bf16.msra.mxu1 %v1447_v7  ;;  %v1449_v16 = vpack.c.bf16 %v400_v13, %v398_v11  ;;  %v462_v18 = vld [vmem:[#allocation7 + $0x228] sm:$0xff]  ;;  %v464_v19 = vld [vmem:[#allocation7 + $0x238] sm:$0xff] }
  0x84   : > { %1510 = vmatprep.subr.bf16.mxu0 %v1509_v8  ;;  %v1451_v17 = vpack.c.bf16 %v399_v15, %v397_v14  ;;  %v461_v20 = vld [vmem:[#allocation7 + $0x220] sm:$0xff]  ;;  %v1513_v21 = vpack.c.bf16 %v464_v19, %v462_v18  ;;  %v463_v22 = vld [vmem:[#allocation7 + $0x230] sm:$0xff]  ;;  %v402_v23 = vld [vmem:[#allocation7 + $0x48] sm:$0xff]  ;;  %p1827_p7 = pnand %p1826_p3, %p2040_p12 }
  0x85   : > { %1512 = vmatpush1.bf16.msra.mxu0 %v1511_v12  ;;  %v404_v24 = vld [vmem:[#allocation7 + $0x58] sm:$0xff]  ;;  %1450 = vmatprep.subr.bf16.mxu1 %v1449_v16  ;;  %v1515_v25 = vpack.c.bf16 %v463_v22, %v461_v20  ;;  %v401_v27 = vld [vmem:[#allocation7 + $0x40] sm:$0xff]  ;;  %v403_v28 = vld [vmem:[#allocation7 + $0x50] sm:$0xff] }
  0x86   : > { %v1453_v26 = vpack.c.bf16 %v404_v24, %v402_v23  ;;  %v466_v29 = vld [vmem:[#allocation7 + $0x248] sm:$0xff]  ;;  %1514 = vmatprep.subr.bf16.mxu0 %v1513_v21  ;;  %v468_v30 = vld [vmem:[#allocation7 + $0x258] sm:$0xff]  ;;  %v465_v31 = vld [vmem:[#allocation7 + $0x240] sm:$0xff]  ;;  %v1455_v33 = vpack.c.bf16 %v403_v28, %v401_v27  ;;  %p1828_p9 = pneg %p1827_p7 }
  0x87   : > { %v467_v32 = vld [vmem:[#allocation7 + $0x250] sm:$0xff]  ;;  %1452 = vmatpush1.bf16.msra.mxu1 %v1451_v17  ;;  %v1517_v34 = vpack.c.bf16 %v468_v30, %v466_v29  ;;  %v406_v35 = vld [vmem:[#allocation7 + $0x68] sm:$0xff]  ;;  %v408_v36 = vld [vmem:[#allocation7 + $0x78] sm:$0xff] }
  0x88   : > { %v405_v37 = vld [vmem:[#allocation7 + $0x60] sm:$0xff]  ;;  %1454 = vmatprep.subr.bf16.mxu1 %v1453_v26  ;;  %v1519_v38 = vpack.c.bf16 %v467_v32, %v465_v31  ;;  %v1457_v39 = vpack.c.bf16 %v408_v36, %v406_v35  ;;  %v407_v40 = vld [vmem:[#allocation7 + $0x70] sm:$0xff]  ;;  %v470_v41 = vld [vmem:[#allocation7 + $0x268] sm:$0xff] }
  0x89   : > { %1516 = vmatpush1.bf16.msra.mxu0 %v1515_v25  ;;  %v472_v42 = vld [vmem:[#allocation7 + $0x278] sm:$0xff]  ;;  %v469_v44 = vld [vmem:[#allocation7 + $0x260] sm:$0xff]  ;;  %v471_v45 = vld [vmem:[#allocation7 + $0x270] sm:$0xff]  ;;  %v1459_v48 = vpack.c.bf16 %v407_v40, %v405_v37 }
  0x8a   : > { %1518 = vmatprep.subr.bf16.mxu0 %v1517_v34  ;;  %v1521_v43 = vpack.c.bf16 %v472_v42, %v470_v41  ;;  %v410_v46 = vld [vmem:[#allocation7 + $0x88] sm:$0xff]  ;;  %v412_v47 = vld [vmem:[#allocation7 + $0x98] sm:$0xff]  ;;  %v1523_v51 = vpack.c.bf16 %v471_v45, %v469_v44  ;;  %v409_v53 = vld [vmem:[#allocation7 + $0x80] sm:$0xff] }
  0x8b   : > { %1456 = vmatpush1.bf16.msra.mxu1 %v1455_v33  ;;  %v474_v49 = vld [vmem:[#allocation7 + $0x288] sm:$0xff]  ;;  %v476_v50 = vld [vmem:[#allocation7 + $0x298] sm:$0xff]  ;;  %v1461_v52 = vpack.c.bf16 %v412_v47, %v410_v46  ;;  %v411_v54 = vld [vmem:[#allocation7 + $0x90] sm:$0xff] }
  0x8c   : > { %1458 = vmatprep.subr.bf16.mxu1 %v1457_v39  ;;  %v473_v55 = vld [vmem:[#allocation7 + $0x280] sm:$0xff]  ;;  %v1525_v56 = vpack.c.bf16 %v476_v50, %v474_v49  ;;  %v475_v57 = vld [vmem:[#allocation7 + $0x290] sm:$0xff]  ;;  %v414_v58 = vld [vmem:[#allocation7 + $0xa8] sm:$0xff]  ;;  %v1463_v62 = vpack.c.bf16 %v411_v54, %v409_v53 }
  0x8d   : > { %1520 = vmatpush1.bf16.msra.mxu0 %v1519_v38  ;;  %v416_v59 = vld [vmem:[#allocation7 + $0xb8] sm:$0xff]  ;;  %v478_v60 = vld [vmem:[#allocation7 + $0x2a8] sm:$0xff]  ;;  %v1527_v63 = vpack.c.bf16 %v475_v57, %v473_v55  ;;  %v413_v1 = vld [vmem:[#allocation7 + $0xa0] sm:$0xff] }
  0x8e   : > { %1522 = vmatprep.subr.bf16.mxu0 %v1521_v43  ;;  %v480_v61 = vld [vmem:[#allocation7 + $0x2b8] sm:$0xff]  ;;  %v1465_v0 = vpack.c.bf16 %v416_v59, %v414_v58  ;;  %v415_v2 = vld [vmem:[#allocation7 + $0xb0] sm:$0xff]  ;;  %v477_v3 = vld [vmem:[#allocation7 + $0x2a0] sm:$0xff] }
  0x8f   : > { %1460 = vmatpush1.bf16.msra.mxu1 %v1459_v48  ;;  %v1529_v4 = vpack.c.bf16 %v480_v61, %v478_v60  ;;  %v479_v5 = vld [vmem:[#allocation7 + $0x2b0] sm:$0xff]  ;;  %v418_v6 = vld [vmem:[#allocation7 + $0xc8] sm:$0xff]  ;;  %v420_v7 = vld [vmem:[#allocation7 + $0xd8] sm:$0xff]  ;;  %v1467_v10 = vpack.c.bf16 %v415_v2, %v413_v1 }
  0x90   : > { %1462 = vmatprep.subr.bf16.mxu1 %v1461_v52  ;;  %v482_v8 = vld [vmem:[#allocation7 + $0x2c8] sm:$0xff]  ;;  %v484_v9 = vld [vmem:[#allocation7 + $0x2d8] sm:$0xff]  ;;  %v1531_v11 = vpack.c.bf16 %v479_v5, %v477_v3  ;;  %v1469_v12 = vpack.c.bf16 %v420_v7, %v418_v6  ;;  %v417_v13 = vld [vmem:[#allocation7 + $0xc0] sm:$0xff] }
  0x91   : > { %1524 = vmatpush1.bf16.msra.mxu0 %v1523_v51  ;;  %v419_v14 = vld [vmem:[#allocation7 + $0xd0] sm:$0xff]  ;;  %v481_v15 = vld [vmem:[#allocation7 + $0x2c0] sm:$0xff]  ;;  %v1533_v16 = vpack.c.bf16 %v484_v9, %v482_v8  ;;  %v422_v18 = vld [vmem:[#allocation7 + $0xe8] sm:$0xff] }
  0x92   : > { %1526 = vmatprep.subr.bf16.mxu0 %v1525_v56  ;;  %v483_v17 = vld [vmem:[#allocation7 + $0x2d0] sm:$0xff]  ;;  %v424_v19 = vld [vmem:[#allocation7 + $0xf8] sm:$0xff]  ;;  %v486_v20 = vld [vmem:[#allocation7 + $0x2e8] sm:$0xff]  ;;  %v1471_v22 = vpack.c.bf16 %v419_v14, %v417_v13 }
  0x93   : > { %1464 = vmatpush1.bf16.msra.mxu1 %v1463_v62  ;;  %v488_v21 = vld [vmem:[#allocation7 + $0x2f8] sm:$0xff]  ;;  %v1535_v23 = vpack.c.bf16 %v483_v17, %v481_v15  ;;  %v1473_v24 = vpack.c.bf16 %v424_v19, %v422_v18  ;;  %v421_v25 = vld [vmem:[#allocation7 + $0xe0] sm:$0xff]  ;;  %v423_v26 = vld [vmem:[#allocation7 + $0xf0] sm:$0xff] }
  0x94   : > { %1466 = vmatprep.subr.bf16.mxu1 %v1465_v0  ;;  %v485_v27 = vld [vmem:[#allocation7 + $0x2e0] sm:$0xff]  ;;  %v1537_v28 = vpack.c.bf16 %v488_v21, %v486_v20  ;;  %v487_v29 = vld [vmem:[#allocation7 + $0x2f0] sm:$0xff]  ;;  %v426_v30 = vld [vmem:[#allocation7 + $0x108] sm:$0xff]  ;;  %v1475_v34 = vpack.c.bf16 %v423_v26, %v421_v25 }
  0x95   : > { %1528 = vmatpush1.bf16.msra.mxu0 %v1527_v63  ;;  %v428_v31 = vld [vmem:[#allocation7 + $0x118] sm:$0xff]  ;;  %v490_v32 = vld [vmem:[#allocation7 + $0x308] sm:$0xff]  ;;  %v1539_v35 = vpack.c.bf16 %v487_v29, %v485_v27  ;;  %v425_v37 = vld [vmem:[#allocation7 + $0x100] sm:$0xff] }
  0x96   : > { %1530 = vmatprep.subr.bf16.mxu0 %v1529_v4  ;;  %v492_v33 = vld [vmem:[#allocation7 + $0x318] sm:$0xff]  ;;  %v1477_v36 = vpack.c.bf16 %v428_v31, %v426_v30  ;;  %v427_v38 = vld [vmem:[#allocation7 + $0x110] sm:$0xff]  ;;  %v489_v39 = vld [vmem:[#allocation7 + $0x300] sm:$0xff] }
  0x97   : > { %1468 = vmatpush1.bf16.msra.mxu1 %v1467_v10  ;;  %v1541_v40 = vpack.c.bf16 %v492_v33, %v490_v32  ;;  %v491_v41 = vld [vmem:[#allocation7 + $0x310] sm:$0xff]  ;;  %v430_v42 = vld [vmem:[#allocation7 + $0x128] sm:$0xff]  ;;  %v432_v43 = vld [vmem:[#allocation7 + $0x138] sm:$0xff]  ;;  %v1479_v46 = vpack.c.bf16 %v427_v38, %v425_v37 }
  0x98   : > { %1470 = vmatprep.subr.bf16.mxu1 %v1469_v12  ;;  %v494_v44 = vld [vmem:[#allocation7 + $0x328] sm:$0xff]  ;;  %v496_v45 = vld [vmem:[#allocation7 + $0x338] sm:$0xff]  ;;  %v1543_v47 = vpack.c.bf16 %v491_v41, %v489_v39  ;;  %v1481_v48 = vpack.c.bf16 %v432_v43, %v430_v42  ;;  %v429_v49 = vld [vmem:[#allocation7 + $0x120] sm:$0xff] }
  0x99   : > { %1532 = vmatpush1.bf16.msra.mxu0 %v1531_v11  ;;  %v431_v50 = vld [vmem:[#allocation7 + $0x130] sm:$0xff]  ;;  %v493_v51 = vld [vmem:[#allocation7 + $0x320] sm:$0xff]  ;;  %v1545_v52 = vpack.c.bf16 %v496_v45, %v494_v44  ;;  %v434_v54 = vld [vmem:[#allocation7 + $0x148] sm:$0xff] }
  0x9a   : > { %1534 = vmatprep.subr.bf16.mxu0 %v1533_v16  ;;  %v495_v53 = vld [vmem:[#allocation7 + $0x330] sm:$0xff]  ;;  %v436_v55 = vld [vmem:[#allocation7 + $0x158] sm:$0xff]  ;;  %v498_v56 = vld [vmem:[#allocation7 + $0x348] sm:$0xff]  ;;  %v1483_v58 = vpack.c.bf16 %v431_v50, %v429_v49 }
  0x9b   : > { %1472 = vmatpush1.bf16.msra.mxu1 %v1471_v22  ;;  %v500_v57 = vld [vmem:[#allocation7 + $0x358] sm:$0xff]  ;;  %v1547_v59 = vpack.c.bf16 %v495_v53, %v493_v51  ;;  %v1485_v60 = vpack.c.bf16 %v436_v55, %v434_v54  ;;  %v433_v61 = vld [vmem:[#allocation7 + $0x140] sm:$0xff]  ;;  %v435_v62 = vld [vmem:[#allocation7 + $0x150] sm:$0xff] }
  0x9c   : > { %1474 = vmatprep.subr.bf16.mxu1 %v1473_v24  ;;  %v497_v63 = vld [vmem:[#allocation7 + $0x340] sm:$0xff]  ;;  %v1549_v0 = vpack.c.bf16 %v500_v57, %v498_v56  ;;  %v499_v1 = vld [vmem:[#allocation7 + $0x350] sm:$0xff]  ;;  %v438_v2 = vld [vmem:[#allocation7 + $0x168] sm:$0xff]  ;;  %v1487_v6 = vpack.c.bf16 %v435_v62, %v433_v61 }
  0x9d   : > { %1536 = vmatpush1.bf16.msra.mxu0 %v1535_v23  ;;  %v440_v3 = vld [vmem:[#allocation7 + $0x178] sm:$0xff]  ;;  %v502_v4 = vld [vmem:[#allocation7 + $0x368] sm:$0xff]  ;;  %v437_v7 = vld [vmem:[#allocation7 + $0x160] sm:$0xff]  ;;  %v1551_v8 = vpack.c.bf16 %v499_v1, %v497_v63 }
  0x9e   : > { %1538 = vmatprep.subr.bf16.mxu0 %v1537_v28  ;;  %v504_v5 = vld [vmem:[#allocation7 + $0x378] sm:$0xff]  ;;  %v1489_v9 = vpack.c.bf16 %v440_v3, %v438_v2  ;;  %v439_v10 = vld [vmem:[#allocation7 + $0x170] sm:$0xff]  ;;  %v501_v11 = vld [vmem:[#allocation7 + $0x360] sm:$0xff] }
  0x9f   : > { %1476 = vmatpush1.bf16.msra.mxu1 %v1475_v34  ;;  %v503_v12 = vld [vmem:[#allocation7 + $0x370] sm:$0xff]  ;;  %v1553_v13 = vpack.c.bf16 %v504_v5, %v502_v4  ;;  %v442_v14 = vld [vmem:[#allocation7 + $0x188] sm:$0xff]  ;;  %v444_v15 = vld [vmem:[#allocation7 + $0x198] sm:$0xff]  ;;  %v1491_v20 = vpack.c.bf16 %v439_v10, %v437_v7 }
  0xa0   : > { %1478 = vmatprep.subr.bf16.mxu1 %v1477_v36  ;;  %v330_v16 = vld [vmem:[%s2134_s11 + $0x8] sm:$0xff]  ;;  %v508_v18 = vld [vmem:[#allocation7 + $0x398] sm:$0xff]  ;;  %v1555_v21 = vpack.c.bf16 %v503_v12, %v501_v11  ;;  %v1493_v22 = vpack.c.bf16 %v444_v15, %v442_v14  ;;  %v441_v23 = vld [vmem:[#allocation7 + $0x180] sm:$0xff] }
  0xa1   : > { %1540 = vmatpush1.bf16.msra.mxu0 %v1539_v35  ;;  %v506_v17 = vld [vmem:[#allocation7 + $0x388] sm:$0xff]  ;;  %597 = vmatprep.mubr.f32.mxu1 %v330_v16  ;;  %v332_v19 = vld [vmem:[%s2134_s11 + $0x18] sm:$0xff]  ;;  %v443_v24 = vld [vmem:[#allocation7 + $0x190] sm:$0xff] }
  0xa2   : > { %1542 = vmatprep.subr.bf16.mxu0 %v1541_v40  ;;  %758 = vmatprep.mubr.f32.mxu0 %v332_v19  ;;  %v505_v25 = vld [vmem:[#allocation7 + $0x380] sm:$0xff]  ;;  %v1557_v26 = vpack.c.bf16 %v508_v18, %v506_v17  ;;  %v507_v27 = vld [vmem:[#allocation7 + $0x390] sm:$0xff]  ;;  %v446_v28 = vld [vmem:[#allocation7 + $0x1a8] sm:$0xff]  ;;  %v1495_v32 = vpack.c.bf16 %v443_v24, %v441_v23 }
  0xa3   : > { %1480 = vmatpush1.bf16.msra.mxu1 %v1479_v46  ;;  %v448_v29 = vld [vmem:[#allocation7 + $0x1b8] sm:$0xff]  ;;  %v510_v30 = vld [vmem:[#allocation7 + $0x3a8] sm:$0xff]  ;;  %v1559_v33 = vpack.c.bf16 %v507_v27, %v505_v25  ;;  %v445_v35 = vld [vmem:[#allocation7 + $0x1a0] sm:$0xff] }
  0xa4   : > { %1482 = vmatprep.subr.bf16.mxu1 %v1481_v48  ;;  %v512_v31 = vld [vmem:[#allocation7 + $0x3b8] sm:$0xff]  ;;  %v1497_v34 = vpack.c.bf16 %v448_v29, %v446_v28  ;;  %v447_v36 = vld [vmem:[#allocation7 + $0x1b0] sm:$0xff]  ;;  %v509_v37 = vld [vmem:[#allocation7 + $0x3a0] sm:$0xff] }
  0xa5   : > { %1544 = vmatpush1.bf16.msra.mxu0 %v1543_v47  ;;  %v1561_v38 = vpack.c.bf16 %v512_v31, %v510_v30  ;;  %v511_v39 = vld [vmem:[#allocation7 + $0x3b0] sm:$0xff]  ;;  %v450_v40 = vld [vmem:[#allocation7 + $0x1c8] sm:$0xff]  ;;  %v452_v41 = vld [vmem:[#allocation7 + $0x1d8] sm:$0xff]  ;;  %v1499_v44 = vpack.c.bf16 %v447_v36, %v445_v35 }
  0xa6   : > { %1546 = vmatprep.subr.bf16.mxu0 %v1545_v52  ;;  %v514_v42 = vld [vmem:[#allocation7 + $0x3c8] sm:$0xff]  ;;  %v516_v43 = vld [vmem:[#allocation7 + $0x3d8] sm:$0xff]  ;;  %v1563_v45 = vpack.c.bf16 %v511_v39, %v509_v37  ;;  %v1501_v46 = vpack.c.bf16 %v452_v41, %v450_v40  ;;  %v449_v47 = vld [vmem:[#allocation7 + $0x1c0] sm:$0xff] }
  0xa7   : > { %1484 = vmatpush1.bf16.msra.mxu1 %v1483_v58  ;;  %v451_v48 = vld [vmem:[#allocation7 + $0x1d0] sm:$0xff]  ;;  %v513_v49 = vld [vmem:[#allocation7 + $0x3c0] sm:$0xff]  ;;  %v1565_v50 = vpack.c.bf16 %v516_v43, %v514_v42  ;;  %v454_v52 = vld [vmem:[#allocation7 + $0x1e8] sm:$0xff] }
  0xa8   : > { %1486 = vmatprep.subr.bf16.mxu1 %v1485_v60  ;;  %v515_v51 = vld [vmem:[#allocation7 + $0x3d0] sm:$0xff]  ;;  %v456_v53 = vld [vmem:[#allocation7 + $0x1f8] sm:$0xff]  ;;  %v518_v54 = vld [vmem:[#allocation7 + $0x3e8] sm:$0xff]  ;;  %v1503_v56 = vpack.c.bf16 %v451_v48, %v449_v47 }
  0xa9   : > { %1548 = vmatpush1.bf16.msra.mxu0 %v1547_v59  ;;  %v520_v55 = vld [vmem:[#allocation7 + $0x3f8] sm:$0xff]  ;;  %v1567_v57 = vpack.c.bf16 %v515_v51, %v513_v49  ;;  %v1505_v58 = vpack.c.bf16 %v456_v53, %v454_v52  ;;  %v453_v59 = vld [vmem:[#allocation7 + $0x1e0] sm:$0xff]  ;;  %v455_v60 = vld [vmem:[#allocation7 + $0x1f0] sm:$0xff] }
  0xaa   : > { %1550 = vmatprep.subr.bf16.mxu0 %v1549_v0  ;;  %v1569_v61 = vpack.c.bf16 %v520_v55, %v518_v54  ;;  %v517_v62 = vld [vmem:[#allocation7 + $0x3e0] sm:$0xff]  ;;  %v519_v63 = vld [vmem:[#allocation7 + $0x3f0] sm:$0xff]  ;;  %v1507_v0 = vpack.c.bf16 %v455_v60, %v453_v59  ;;  %v334_v4 = vld [vmem:[%s2134_s11 + $0x28] sm:$0xff] }
  0xab   : > { %1488 = vmatpush1.bf16.msra.mxu1 %v1487_v6  ;;  %v1571_v1 = vpack.c.bf16 %v519_v63, %v517_v62  ;;  %v329_v2 = vld [vmem:[%s2134_s11] sm:$0xff]  ;;  %v331_v3 = vld [vmem:[%s2134_s11 + $0x10] sm:$0xff]  ;;  %v336_v5 = vld [vmem:[%s2134_s11 + $0x38] sm:$0xff] }
  0xac   : > { %1490 = vmatprep.subr.bf16.mxu1 %v1489_v9  ;;  %v333_v6 = vld [vmem:[%s2134_s11 + $0x20] sm:$0xff]  ;;  %v335_v7 = vld [vmem:[%s2134_s11 + $0x30] sm:$0xff]  ;;  %v340_v9 = vld [vmem:[%s2134_s11 + $0x58] sm:$0xff] }
  0xad   : > { %1552 = vmatpush1.bf16.msra.mxu0 %v1551_v8  ;;  %v338_v8 = vld [vmem:[%s2134_s11 + $0x48] sm:$0xff]  ;;  %v337_v10 = vld [vmem:[%s2134_s11 + $0x40] sm:$0xff]  ;;  %v339_v11 = vld [vmem:[%s2134_s11 + $0x50] sm:$0xff] }
  0xae   : > { %1554 = vmatprep.subr.bf16.mxu0 %v1553_v13  ;;  %v342_v12 = vld [vmem:[%s2134_s11 + $0x68] sm:$0xff]  ;;  %v344_v13 = vld [vmem:[%s2134_s11 + $0x78] sm:$0xff]  ;;  %v341_v14 = vld [vmem:[%s2134_s11 + $0x60] sm:$0xff] }
  0xaf   : > { %1492 = vmatpush1.bf16.msra.mxu1 %v1491_v20  ;;  %v343_v15 = vld [vmem:[%s2134_s11 + $0x70] sm:$0xff]  ;;  %v346_v16 = vld [vmem:[%s2134_s11 + $0x88] sm:$0xff]  ;;  %v348_v17 = vld [vmem:[%s2134_s11 + $0x98] sm:$0xff] }
  0xb0   : > { %1494 = vmatprep.subr.bf16.mxu1 %v1493_v22  ;;  %v345_v18 = vld [vmem:[%s2134_s11 + $0x80] sm:$0xff]  ;;  %v347_v19 = vld [vmem:[%s2134_s11 + $0x90] sm:$0xff]  ;;  %v350_v20 = vld [vmem:[%s2134_s11 + $0xa8] sm:$0xff] }
  0xb1   : > { %1556 = vmatpush1.bf16.msra.mxu0 %v1555_v21  ;;  %v352_v21 = vld [vmem:[%s2134_s11 + $0xb8] sm:$0xff]  ;;  %v349_v22 = vld [vmem:[%s2134_s11 + $0xa0] sm:$0xff]  ;;  %v351_v23 = vld [vmem:[%s2134_s11 + $0xb0] sm:$0xff] }
  0xb2   : > { %1558 = vmatprep.subr.bf16.mxu0 %v1557_v26  ;;  %v354_v24 = vld [vmem:[%s2134_s11 + $0xc8] sm:$0xff]  ;;  %v356_v25 = vld [vmem:[%s2134_s11 + $0xd8] sm:$0xff]  ;;  %v353_v26 = vld [vmem:[%s2134_s11 + $0xc0] sm:$0xff] }
  0xb3   : > { %1496 = vmatpush1.bf16.msra.mxu1 %v1495_v32  ;;  %v355_v27 = vld [vmem:[%s2134_s11 + $0xd0] sm:$0xff]  ;;  %v358_v28 = vld [vmem:[%s2134_s11 + $0xe8] sm:$0xff]  ;;  %v360_v29 = vld [vmem:[%s2134_s11 + $0xf8] sm:$0xff] }
  0xb4   : > { %1498 = vmatprep.subr.bf16.mxu1 %v1497_v34  ;;  %v357_v30 = vld [vmem:[%s2134_s11 + $0xe0] sm:$0xff]  ;;  %v359_v31 = vld [vmem:[%s2134_s11 + $0xf0] sm:$0xff]  ;;  %v362_v32 = vld [vmem:[%s2134_s11 + $0x108] sm:$0xff] }
  0xb5   : > { %1560 = vmatpush1.bf16.msra.mxu0 %v1559_v33  ;;  %v364_v33 = vld [vmem:[%s2134_s11 + $0x118] sm:$0xff]  ;;  %v361_v34 = vld [vmem:[%s2134_s11 + $0x100] sm:$0xff]  ;;  %v363_v35 = vld [vmem:[%s2134_s11 + $0x110] sm:$0xff] }
  0xb6   : > { %1562 = vmatprep.subr.bf16.mxu0 %v1561_v38  ;;  %v366_v36 = vld [vmem:[%s2134_s11 + $0x128] sm:$0xff]  ;;  %v368_v37 = vld [vmem:[%s2134_s11 + $0x138] sm:$0xff]  ;;  %v365_v38 = vld [vmem:[%s2134_s11 + $0x120] sm:$0xff] }
  0xb7   : > { %1500 = vmatpush1.bf16.msra.mxu1 %v1499_v44  ;;  %v367_v39 = vld [vmem:[%s2134_s11 + $0x130] sm:$0xff]  ;;  %v370_v40 = vld [vmem:[%s2134_s11 + $0x148] sm:$0xff]  ;;  %v372_v41 = vld [vmem:[%s2134_s11 + $0x158] sm:$0xff] }
  0xb8   : > { %1502 = vmatprep.subr.bf16.mxu1 %v1501_v46  ;;  %v369_v42 = vld [vmem:[%s2134_s11 + $0x140] sm:$0xff]  ;;  %v371_v43 = vld [vmem:[%s2134_s11 + $0x150] sm:$0xff]  ;;  %v374_v44 = vld [vmem:[%s2134_s11 + $0x168] sm:$0xff] }
  0xb9   : > { %1564 = vmatpush1.bf16.msra.mxu0 %v1563_v45  ;;  %v376_v45 = vld [vmem:[%s2134_s11 + $0x178] sm:$0xff]  ;;  %v373_v46 = vld [vmem:[%s2134_s11 + $0x160] sm:$0xff]  ;;  %v375_v47 = vld [vmem:[%s2134_s11 + $0x170] sm:$0xff] }
  0xba   : > { %1566 = vmatprep.subr.bf16.mxu0 %v1565_v50  ;;  %v378_v48 = vld [vmem:[%s2134_s11 + $0x188] sm:$0xff]  ;;  %v380_v49 = vld [vmem:[%s2134_s11 + $0x198] sm:$0xff]  ;;  %v377_v50 = vld [vmem:[%s2134_s11 + $0x180] sm:$0xff] }
  0xbb   : > { %1504 = vmatpush1.bf16.msra.mxu1 %v1503_v56  ;;  %v379_v51 = vld [vmem:[%s2134_s11 + $0x190] sm:$0xff]  ;;  %v382_v52 = vld [vmem:[%s2134_s11 + $0x1a8] sm:$0xff]  ;;  %v384_v53 = vld [vmem:[%s2134_s11 + $0x1b8] sm:$0xff] }
  0xbc   : > { %1506 = vmatprep.subr.bf16.mxu1 %v1505_v58  ;;  %v381_v54 = vld [vmem:[%s2134_s11 + $0x1a0] sm:$0xff]  ;;  %v383_v55 = vld [vmem:[%s2134_s11 + $0x1b0] sm:$0xff]  ;;  %v386_v56 = vld [vmem:[%s2134_s11 + $0x1c8] sm:$0xff] }
  0xbd   : > { %1568 = vmatpush1.bf16.msra.mxu0 %v1567_v57  ;;  %v388_v57 = vld [vmem:[%s2134_s11 + $0x1d8] sm:$0xff]  ;;  %v385_v58 = vld [vmem:[%s2134_s11 + $0x1c0] sm:$0xff]  ;;  %v387_v59 = vld [vmem:[%s2134_s11 + $0x1d0] sm:$0xff] }
  0xbe   : > { %1570 = vmatprep.subr.bf16.mxu0 %v1569_v61  ;;  %v390_v60 = vld [vmem:[%s2134_s11 + $0x1e8] sm:$0xff]  ;;  %v392_v61 = vld [vmem:[%s2134_s11 + $0x1f8] sm:$0xff]  ;;  %v389_v62 = vld [vmem:[%s2134_s11 + $0x1e0] sm:$0xff] }
  0xbf   : > { %1508 = vmatpush1.bf16.msra.mxu1 %v1507_v0  ;;  %v391_v63 = vld [vmem:[%s2134_s11 + $0x1f0] sm:$0xff]  ;;  %v523_v0 = vlaneseq  ;;  %s1908_s11 = smov [#allocation8]  }
  0xc0   : > { %s1829_s2 = sshll.u32 %s1908_s11, 4  ;;  %s1830_s2 = int_to_ptr.vmem [resolvable:$false] %s1829_s2 }
  0xc1   : > { %1572 = vmatpush1.bf16.msra.mxu0 %v1571_v1  ;;  %v524_v1 = vshrl.u32 %v523_v0, 7  ;;  %s1831_s29 = scalar_lea.vmem %s1830_s2, 8192  ;;  %p1832_p1 = scmp.lt.s32.totalorder %s2704_s10, %s1830_s2 }
  0xc2   : > { %598 = vmatmul.mubr.f32.vlgmr.msra.gmra.mrb[0].mxu1 %v329_v2  ;;  %p1833_p5 = scmp.lt.s32.totalorder %s1831_s29, %s1825_s8 }
  0xc3   : > { %603 = vmatprep.mubr.f32.mxu1 %v334_v4  ;;  %v2218_v2 = vsub.s32 0, %v524_v1  ;;  %v2223_v4 = vsub.s32 1, %v524_v1 }
  0xc4   : > { %759 = vmatmul.mubr.f32.vlgmr.msra.gmra.mrb[0].mxu0 %v331_v3  ;;  %v521_v3 = vld [vmem:[%s2755_s3] sm:$0x3]  ;;  %p1834_p2 = por %p1833_p5, %p1832_p1 }
  0xc5   : > { %764 = vmatprep.mubr.f32.mxu0 %v336_v5  ;;  %v2226_v5 = vrot.slane %v521_v3, %v2218_v2 }
  0xc6   : > { %604 = vmatmul.mubr.f32.gmra.mrb[2].mxu1 %v333_v6  ;;  %v2229_v6 = vrot.slane %v521_v3, %v2223_v4  ;;  %v864_v3 = vld [vmem:[%s2144_s19 + $0x48] sm:$0xff]  ;;  %p1835_p6 = pnand %p1834_p2, %p1828_p9 }
  0xc7   : > { %609 = vmatprep.mubr.f32.mxu1 %v338_v8 }
  0xc8   : > { %765 = vmatmul.mubr.f32.gmra.mrb[2].mxu0 %v335_v7 }
  0xc9   : > { %770 = vmatprep.mubr.f32.mxu0 %v340_v9 }
  0xca   : > { %610 = vmatmul.mubr.f32.gmra.mrb[4].mxu1 %v337_v10 }
  0xcb   : > { %615 = vmatprep.mubr.f32.mxu1 %v342_v12 }
  0xcc   : > { %771 = vmatmul.mubr.f32.gmra.mrb[4].mxu0 %v339_v11 }
  0xcd   : > { %776 = vmatprep.mubr.f32.mxu0 %v344_v13  ;;  %v855_v13 = vld [vmem:[%s2144_s19] sm:$0xff] }
  0xce   : > { %616 = vmatmul.mubr.f32.gmra.mrb[6].mxu1 %v341_v14 }
  0xcf   : > { %621 = vmatprep.mubr.f32.mxu1 %v346_v16 }
  0xd0   : > { %777 = vmatmul.mubr.f32.gmra.mrb[6].mxu0 %v343_v15  ;;  %v856_v15 = vld [vmem:[%s2144_s19 + $0x8] sm:$0xff] }
  0xd1   : > { %782 = vmatprep.mubr.f32.mxu0 %v348_v17 }
  0xd2   : > { %622 = vmatmul.mubr.f32.gmra.mrb[8].mxu1 %v345_v18 }
  0xd3   : > { %627 = vmatprep.mubr.f32.mxu1 %v350_v20 }
  0xd4   : > { %783 = vmatmul.mubr.f32.gmra.mrb[8].mxu0 %v347_v19 }
  0xd5   : > { %788 = vmatprep.mubr.f32.mxu0 %v352_v21 }
  0xd6   : > { %628 = vmatmul.mubr.f32.gmra.mrb[10].mxu1 %v349_v22 }
  0xd7   : > { %633 = vmatprep.mubr.f32.mxu1 %v354_v24 }
  0xd8   : > { %789 = vmatmul.mubr.f32.gmra.mrb[10].mxu0 %v351_v23  ;;  %v857_v23 = vld [vmem:[%s2144_s19 + $0x10] sm:$0xff] }
  0xd9   : > { %794 = vmatprep.mubr.f32.mxu0 %v356_v25 }
  0xda   : > { %634 = vmatmul.mubr.f32.gmra.mrb[12].mxu1 %v353_v26 }
  0xdb   : > { %639 = vmatprep.mubr.f32.mxu1 %v358_v28 }
  0xdc   : > { %795 = vmatmul.mubr.f32.gmra.mrb[12].mxu0 %v355_v27  ;;  %v858_v27 = vld [vmem:[%s2144_s19 + $0x18] sm:$0xff] }
  0xdd   : > { %800 = vmatprep.mubr.f32.mxu0 %v360_v29 }
  0xde   : > { %640 = vmatmul.mubr.f32.gmra.mrb[14].mxu1 %v357_v30 }
  0xdf   : > { %645 = vmatprep.mubr.f32.mxu1 %v362_v32 }
  0xe0   : > { %801 = vmatmul.mubr.f32.gmra.mrb[14].mxu0 %v359_v31 }
  0xe1   : > { %806 = vmatprep.mubr.f32.mxu0 %v364_v33 }
  0xe2   : > { %646 = vmatmul.mubr.f32.gmra.mrb[16].mxu1 %v361_v34 }
  0xe3   : > { %651 = vmatprep.mubr.f32.mxu1 %v366_v36 }
  0xe4   : > { %807 = vmatmul.mubr.f32.gmra.mrb[16].mxu0 %v363_v35 }
  0xe5   : > { %812 = vmatprep.mubr.f32.mxu0 %v368_v37 }
  0xe6   : > { %652 = vmatmul.mubr.f32.gmra.mrb[18].mxu1 %v365_v38  ;;  %v859_v38 = vld [vmem:[%s2144_s19 + $0x20] sm:$0xff] }
  0xe7   : > { %657 = vmatprep.mubr.f32.mxu1 %v370_v40  ;;  %v860_v40 = vld [vmem:[%s2144_s19 + $0x28] sm:$0xff] }
  0xe8   : > { %813 = vmatmul.mubr.f32.gmra.mrb[18].mxu0 %v367_v39 }
  0xe9   : > { %818 = vmatprep.mubr.f32.mxu0 %v372_v41 }
  0xea   : > { %658 = vmatmul.mubr.f32.gmra.mrb[20].mxu1 %v369_v42 }
  0xeb   : > { %663 = vmatprep.mubr.f32.mxu1 %v374_v44 }
  0xec   : > { %819 = vmatmul.mubr.f32.gmra.mrb[20].mxu0 %v371_v43 }
  0xed   : > { %824 = vmatprep.mubr.f32.mxu0 %v376_v45 }
  0xee   : > { %664 = vmatmul.mubr.f32.gmra.mrb[22].mxu1 %v373_v46 }
  0xef   : > { %669 = vmatprep.mubr.f32.mxu1 %v378_v48 }
  0xf0   : > { %825 = vmatmul.mubr.f32.gmra.mrb[22].mxu0 %v375_v47 }
  0xf1   : > { %830 = vmatprep.mubr.f32.mxu0 %v380_v49  ;;  %v861_v49 = vld [vmem:[%s2144_s19 + $0x30] sm:$0xff] }
  0xf2   : > { %670 = vmatmul.mubr.f32.gmra.mrb[24].mxu1 %v377_v50 }
  0xf3   : > { %675 = vmatprep.mubr.f32.mxu1 %v382_v52 }
  0xf4   : > { %831 = vmatmul.mubr.f32.gmra.mrb[24].mxu0 %v379_v51 }
  0xf5   : > { %836 = vmatprep.mubr.f32.mxu0 %v384_v53  ;;  %v862_v53 = vld [vmem:[%s2144_s19 + $0x38] sm:$0xff] }
  0xf6   : > { %676 = vmatmul.mubr.f32.gmra.mrb[26].mxu1 %v381_v54 }
  0xf7   : > { %681 = vmatprep.mubr.f32.mxu1 %v386_v56 }
  0xf8   : > { %837 = vmatmul.mubr.f32.gmra.mrb[26].mxu0 %v383_v55 }
  0xf9   : > { %842 = vmatprep.mubr.f32.mxu0 %v388_v57 }
  0xfa   : > { %682 = vmatmul.mubr.f32.gmra.mrb[28].mxu1 %v385_v58 }
  0xfb   : > { %687 = vmatprep.mubr.f32.mxu1 %v390_v60 }
  0xfc   : > { %843 = vmatmul.mubr.f32.gmra.mrb[28].mxu0 %v387_v59 }
  0xfd   : > { %848 = vmatprep.mubr.f32.mxu0 %v392_v61 }
  0xfe   : > { %688 = vmatmul.mubr.f32.gmra.mrb[30].mxu1 %v389_v62 }
 0x100   : > { %849 = vmatmul.mubr.f32.gmra.mrb[30].mxu0 %v391_v63  ;;  %v863_v63 = vld [vmem:[%s2144_s19 + $0x40] sm:$0xff] }
 0x195   : > { %v599_v7 = vpop.f32.mrb[0].mxu1 }
 0x196   : > { %v600_v8 = vadd.f32 %v599_v7, %v2226_v5  ;;  %v601_v9 = vpop.f32.mrb[1].mxu1 }
 0x197   : > { %v760_v10 = vpop.f32.mrb[0].mxu0  ;;  %v602_v11 = vadd.f32 %v601_v9, %v2229_v6 }
 0x198   : > { %v762_v12 = vpop.f32.mrb[1].mxu0  ;;  %v761_v14 = vadd.f32 %v760_v10, %v600_v8 }
 0x199   : > { %v763_v16 = vadd.f32 %v762_v12, %v602_v11  ;;  %v605_v17 = vpop.f32.mrb[2].mxu1 }
 0x19a   : > { %v606_v18 = vadd.f32 %v605_v17, %v2226_v5  ;;  %v607_v19 = vpop.f32.mrb[3].mxu1  ;;  %v2236_v21 = vadd.f32 %v855_v13, %v761_v14 }
 0x19b   : > { %v766_v20 = vpop.f32.mrb[2].mxu0  ;;  %v608_v22 = vadd.f32 %v607_v19, %v2229_v6  ;;  %v2240_v25 = vadd.f32 %v856_v15, %v763_v16  ;;  %v865_v16 = vld [vmem:[%s2144_s19 + $0x50] sm:$0xff]  ;;  %v866_v19 = vld [vmem:[%s2144_s19 + $0x58] sm:$0xff] }
 0x19c   : > { %v768_v24 = vpop.f32.mrb[3].mxu0  ;;  %v767_v26 = vadd.f32 %v766_v20, %v606_v18 }
 0x19d   : > { %v769_v28 = vadd.f32 %v768_v24, %v608_v22  ;;  %v611_v29 = vpop.f32.mrb[4].mxu1  ;;  %v921_v30 = vadd.f32 %v2240_v25, %v2236_v21 }
 0x19e   : > { %v2245_v31 = vadd.f32 %v857_v23, %v767_v26  ;;  %v612_v32 = vadd.f32 %v611_v29, %v2226_v5  ;;  %v613_v33 = vpop.f32.mrb[5].mxu1 }
 0x19f   : > { %v772_v34 = vpop.f32.mrb[4].mxu0  ;;  %v2248_v35 = vadd.f32 %v858_v27, %v769_v28  ;;  %v614_v36 = vadd.f32 %v613_v33, %v2229_v6  ;;  %922 = vadd.xlane.f32.xlu0 %v921_v30 }
 0x1a0   : > { %v774_v37 = vpop.f32.mrb[5].mxu0  ;;  %v773_v39 = vadd.f32 %v772_v34, %v612_v32  ;;  %v867_v32 = vld [vmem:[%s2144_s19 + $0x60] sm:$0xff] }
 0x1a1   : > { %v775_v41 = vadd.f32 %v774_v37, %v614_v36  ;;  %v617_v42 = vpop.f32.mrb[6].mxu1  ;;  %v924_v43 = vadd.f32 %v2248_v35, %v2245_v31  ;;  %v868_v36 = vld [vmem:[%s2144_s19 + $0x68] sm:$0xff] }
 0x1a2   : > { %v618_v44 = vadd.f32 %v617_v42, %v2226_v5  ;;  %v619_v45 = vpop.f32.mrb[7].mxu1  ;;  %v2256_v47 = vadd.f32 %v859_v38, %v773_v39 }
 0x1a3   : > { %v778_v46 = vpop.f32.mrb[6].mxu0  ;;  %v620_v48 = vadd.f32 %v619_v45, %v2229_v6  ;;  %925 = vadd.xlane.f32.xlu0 %v924_v43  ;;  %v2260_v51 = vadd.f32 %v860_v40, %v775_v41 }
 0x1a4   : > { %v780_v50 = vpop.f32.mrb[7].mxu0  ;;  %v779_v52 = vadd.f32 %v778_v46, %v618_v44  ;;  %v869_v46 = vld [vmem:[%s2144_s19 + $0x70] sm:$0xff] }
 0x1a5   : > { %v781_v54 = vadd.f32 %v780_v50, %v620_v48  ;;  %v623_v55 = vpop.f32.mrb[8].mxu1  ;;  %v927_v56 = vadd.f32 %v2260_v51, %v2256_v47  ;;  %v870_v50 = vld [vmem:[%s2144_s19 + $0x78] sm:$0xff] }
 0x1a6   : > { %v2265_v57 = vadd.f32 %v861_v49, %v779_v52  ;;  %v624_v58 = vadd.f32 %v623_v55, %v2226_v5  ;;  %v625_v59 = vpop.f32.mrb[9].mxu1 }
 0x1a7   : > { %v784_v60 = vpop.f32.mrb[8].mxu0  ;;  %v2268_v61 = vadd.f32 %v862_v53, %v781_v54  ;;  %v626_v62 = vadd.f32 %v625_v59, %v2229_v6  ;;  %928 = vadd.xlane.f32.xlu1 %v927_v56 }
 0x1a8   : > { %v786_v0 = vpop.f32.mrb[9].mxu0  ;;  %v785_v1 = vadd.f32 %v784_v60, %v624_v58 }
 0x1a9   : > { %v787_v7 = vadd.f32 %v786_v0, %v626_v62  ;;  %v629_v8 = vpop.f32.mrb[10].mxu1  ;;  %v930_v9 = vadd.f32 %v2268_v61, %v2265_v57 }
 0x1aa   : > { %v2275_v10 = vadd.f32 %v863_v63, %v785_v1  ;;  %v630_v11 = vadd.f32 %v629_v8, %v2226_v5  ;;  %v631_v12 = vpop.f32.mrb[11].mxu1  ;;  %v871_v63 = vld [vmem:[%s2144_s19 + $0x80] sm:$0xff] }
 0x1ab   : > { %v790_v13 = vpop.f32.mrb[10].mxu0  ;;  %v2278_v14 = vadd.f32 %v864_v3, %v787_v7  ;;  %v632_v15 = vadd.f32 %v631_v12, %v2229_v6  ;;  %931 = vadd.xlane.f32.xlu1 %v930_v9  ;;  %v872_v3 = vld [vmem:[%s2144_s19 + $0x88] sm:$0xff] }
 0x1ac   : > { %v792_v17 = vpop.f32.mrb[11].mxu0  ;;  %v791_v18 = vadd.f32 %v790_v13, %v630_v11 }
 0x1ad   : > { %v793_v20 = vadd.f32 %v792_v17, %v632_v15  ;;  %v635_v22 = vpop.f32.mrb[12].mxu1  ;;  %v933_v23 = vadd.f32 %v2278_v14, %v2275_v10 }
 0x1ae   : > { %v2285_v24 = vadd.f32 %v865_v16, %v791_v18  ;;  %v636_v26 = vadd.f32 %v635_v22, %v2226_v5  ;;  %v637_v27 = vpop.f32.mrb[13].mxu1  ;;  %v873_v18 = vld [vmem:[%s2144_s19 + $0x90] sm:$0xff]  ;;  %v874_v22 = vld [vmem:[%s2144_s19 + $0x98] sm:$0xff] }
 0x1af   : > { %v796_v28 = vpop.f32.mrb[12].mxu0  ;;  %v2288_v29 = vadd.f32 %v866_v19, %v793_v20  ;;  %v638_v30 = vadd.f32 %v637_v27, %v2229_v6  ;;  %934 = vadd.xlane.f32.xlu0 %v933_v23 }
 0x1b0   : > { %v798_v33 = vpop.f32.mrb[13].mxu0  ;;  %v797_v34 = vadd.f32 %v796_v28, %v636_v26 }
 0x1b1   : > { %v799_v37 = vadd.f32 %v798_v33, %v638_v30  ;;  %v641_v38 = vpop.f32.mrb[14].mxu1  ;;  %v936_v39 = vadd.f32 %v2288_v29, %v2285_v24 }
 0x1b2   : > { %v2295_v40 = vadd.f32 %v867_v32, %v797_v34  ;;  %v642_v41 = vadd.f32 %v641_v38, %v2226_v5  ;;  %v643_v42 = vpop.f32.mrb[15].mxu1 }
 0x1b3   : > { %v802_v43 = vpop.f32.mrb[14].mxu0  ;;  %v2298_v44 = vadd.f32 %v868_v36, %v799_v37  ;;  %v644_v45 = vadd.f32 %v643_v42, %v2229_v6  ;;  %937 = vadd.xlane.f32.xlu1 %v936_v39  ;;  %v875_v37 = vld [vmem:[%s2144_s19 + $0xa0] sm:$0xff] }
 0x1b4   : > { %v804_v48 = vpop.f32.mrb[15].mxu0  ;;  %v803_v49 = vadd.f32 %v802_v43, %v642_v41  ;;  %v876_v41 = vld [vmem:[%s2144_s19 + $0xa8] sm:$0xff] }
 0x1b5   : > { %v805_v52 = vadd.f32 %v804_v48, %v644_v45  ;;  %v647_v53 = vpop.f32.mrb[16].mxu1  ;;  %v939_v54 = vadd.f32 %v2298_v44, %v2295_v40 }
 0x1b6   : > { %v2305_v55 = vadd.f32 %v869_v46, %v803_v49  ;;  %v648_v56 = vadd.f32 %v647_v53, %v2226_v5  ;;  %v649_v58 = vpop.f32.mrb[17].mxu1 }
 0x1b7   : > { %v808_v59 = vpop.f32.mrb[16].mxu0  ;;  %v2308_v60 = vadd.f32 %v870_v50, %v805_v52  ;;  %v650_v62 = vadd.f32 %v649_v58, %v2229_v6  ;;  %940 = vadd.xlane.f32.xlu0 %v939_v54  ;;  %v877_v54 = vld [vmem:[%s2144_s19 + $0xb0] sm:$0xff] }
 0x1b8   : > { %v810_v0 = vpop.f32.mrb[17].mxu0  ;;  %v809_v1 = vadd.f32 %v808_v59, %v648_v56  ;;  %v878_v59 = vld [vmem:[%s2144_s19 + $0xb8] sm:$0xff] }
 0x1b9   : > { %v811_v7 = vadd.f32 %v810_v0, %v650_v62  ;;  %v653_v8 = vpop.f32.mrb[18].mxu1  ;;  %v942_v9 = vadd.f32 %v2308_v60, %v2305_v55 }
 0x1ba   : > { %v2315_v11 = vadd.f32 %v871_v63, %v809_v1  ;;  %v654_v12 = vadd.f32 %v653_v8, %v2226_v5  ;;  %v655_v13 = vpop.f32.mrb[19].mxu1 }
 0x1bb   : > { %v814_v15 = vpop.f32.mrb[18].mxu0  ;;  %v2318_v16 = vadd.f32 %v872_v3, %v811_v7  ;;  %v656_v17 = vadd.f32 %v655_v13, %v2229_v6  ;;  %943 = vadd.xlane.f32.xlu1 %v942_v9  ;;  %v879_v13 = vld [vmem:[%s2144_s19 + $0xc0] sm:$0xff] }
 0x1bc   : > { %v816_v19 = vpop.f32.mrb[19].mxu0  ;;  %v815_v20 = vadd.f32 %v814_v15, %v654_v12 }
 0x1bd   : > { %v817_v23 = vadd.f32 %v816_v19, %v656_v17  ;;  %v659_v26 = vpop.f32.mrb[20].mxu1  ;;  %v945_v27 = vadd.f32 %v2318_v16, %v2315_v11 }
 0x1be   : > { %v2325_v28 = vadd.f32 %v873_v18, %v815_v20  ;;  %v660_v30 = vadd.f32 %v659_v26, %v2226_v5  ;;  %v661_v32 = vpop.f32.mrb[21].mxu1  ;;  %v880_v18 = vld [vmem:[%s2144_s19 + $0xc8] sm:$0xff] }
 0x1bf   : > { %v820_v33 = vpop.f32.mrb[20].mxu0  ;;  %v2328_v34 = vadd.f32 %v874_v22, %v817_v23  ;;  %v662_v36 = vadd.f32 %v661_v32, %v2229_v6  ;;  %946 = vadd.xlane.f32.xlu0 %v945_v27 }
 0x1c0   : > { %v822_v38 = vpop.f32.mrb[21].mxu0  ;;  %v821_v39 = vadd.f32 %v820_v33, %v660_v30 }
 0x1c1   : > { %v823_v42 = vadd.f32 %v822_v38, %v662_v36  ;;  %v665_v43 = vpop.f32.mrb[22].mxu1  ;;  %v948_v45 = vadd.f32 %v2328_v34, %v2325_v28  ;;  %v881_v36 = vld [vmem:[%s2144_s19 + $0xd0] sm:$0xff] }
 0x1c2   : > { %v2335_v46 = vadd.f32 %v875_v37, %v821_v39  ;;  %v666_v48 = vadd.f32 %v665_v43, %v2226_v5  ;;  %v667_v49 = vpop.f32.mrb[23].mxu1  ;;  %v882_v39 = vld [vmem:[%s2144_s19 + $0xd8] sm:$0xff] }
 0x1c3   : > { %v826_v50 = vpop.f32.mrb[22].mxu0  ;;  %v2338_v52 = vadd.f32 %v876_v41, %v823_v42  ;;  %v668_v53 = vadd.f32 %v667_v49, %v2229_v6  ;;  %949 = vadd.xlane.f32.xlu1 %v948_v45 }
 0x1c4   : > { %v828_v56 = vpop.f32.mrb[23].mxu0  ;;  %v827_v58 = vadd.f32 %v826_v50, %v666_v48 }
 0x1c5   : > { %v829_v62 = vadd.f32 %v828_v56, %v668_v53  ;;  %v671_v63 = vpop.f32.mrb[24].mxu1  ;;  %v951_v0 = vadd.f32 %v2338_v52, %v2335_v46  ;;  %v883_v56 = vld [vmem:[%s2144_s19 + $0xe0] sm:$0xff] }
 0x1c6   : > { %v2345_v1 = vadd.f32 %v877_v54, %v827_v58  ;;  %v672_v3 = vadd.f32 %v671_v63, %v2226_v5  ;;  %v673_v7 = vpop.f32.mrb[25].mxu1 }
 0x1c7   : > { %v832_v8 = vpop.f32.mrb[24].mxu0  ;;  %v2348_v9 = vadd.f32 %v878_v59, %v829_v62  ;;  %v674_v12 = vadd.f32 %v673_v7, %v2229_v6  ;;  %952 = vadd.xlane.f32.xlu0 %v951_v0  ;;  %v884_v62 = vld [vmem:[%s2144_s19 + $0xe8] sm:$0xff] }
 0x1c8   : > { %v834_v15 = vpop.f32.mrb[25].mxu0  ;;  %v833_v17 = vadd.f32 %v832_v8, %v672_v3 }
 0x1c9   : > { %v835_v19 = vadd.f32 %v834_v15, %v674_v12  ;;  %v677_v20 = vpop.f32.mrb[26].mxu1  ;;  %v954_v22 = vadd.f32 %v2348_v9, %v2345_v1 }
 0x1ca   : > { %v2355_v23 = vadd.f32 %v879_v13, %v833_v17  ;;  %v678_v26 = vadd.f32 %v677_v20, %v2226_v5  ;;  %v679_v27 = vpop.f32.mrb[27].mxu1 }
 0x1cb   : > { %v838_v30 = vpop.f32.mrb[26].mxu0  ;;  %v2358_v32 = vadd.f32 %v880_v18, %v835_v19  ;;  %v680_v33 = vadd.f32 %v679_v27, %v2229_v6  ;;  %955 = vadd.xlane.f32.xlu1 %v954_v22  ;;  %v885_v18 = vld [vmem:[%s2144_s19 + $0xf0] sm:$0xff]  ;;  %v886_v22 = vld [vmem:[%s2144_s19 + $0xf8] sm:$0xff] }
 0x1cc   : > { %v840_v37 = vpop.f32.mrb[27].mxu0  ;;  %v839_v38 = vadd.f32 %v838_v30, %v678_v26 }
 0x1cd   : > { %v841_v41 = vadd.f32 %v840_v37, %v680_v33  ;;  %v683_v42 = vpop.f32.mrb[28].mxu1  ;;  %v957_v43 = vadd.f32 %v2358_v32, %v2355_v23 }
 0x1ce   : > { %v2365_v45 = vadd.f32 %v881_v36, %v839_v38  ;;  %v684_v48 = vadd.f32 %v683_v42, %v2226_v5  ;;  %v685_v49 = vpop.f32.mrb[29].mxu1 }
 0x1cf   : > { %v844_v50 = vpop.f32.mrb[28].mxu0  ;;  %v2368_v53 = vadd.f32 %v882_v39, %v841_v41  ;;  %v686_v54 = vadd.f32 %v685_v49, %v2229_v6  ;;  %958 = vadd.xlane.f32.xlu0 %v957_v43 }
 0x1d0   : > { %v846_v58 = vpop.f32.mrb[29].mxu0  ;;  %v845_v59 = vadd.f32 %v844_v50, %v684_v48 }
 0x1d1   : > { %v847_v63 = vadd.f32 %v846_v58, %v686_v54  ;;  %v689_v0 = vpop.f32.mrb[30].mxu1  ;;  %v960_v3 = vadd.f32 %v2368_v53, %v2365_v45 }
 0x1d2   : > { %v2375_v7 = vadd.f32 %v883_v56, %v845_v59  ;;  %v690_v8 = vadd.f32 %v689_v0, %v2226_v5  ;;  %v691_v12 = vpop.f32.mrb[31].mxu1 }
 0x1d3   : > { %v850_v13 = vpop.f32.mrb[30].mxu0  ;;  %v2378_v15 = vadd.f32 %v884_v62, %v847_v63  ;;  %v692_v17 = vadd.f32 %v691_v12, %v2229_v6  ;;  %961 = vadd.xlane.f32.xlu1 %v960_v3 }
 0x1d4   : > { %v852_v19 = vpop.f32.mrb[31].mxu0  ;;  %v851_v20 = vadd.f32 %v850_v13, %v690_v8 }
 0x1d5   : > { %v853_v26 = vadd.f32 %v852_v19, %v692_v17  ;;  %v963_v27 = vadd.f32 %v2378_v15, %v2375_v7 }
 0x1d6   : > { %v2385_v30 = vadd.f32 %v885_v18, %v851_v20 }
 0x1d7   : > { %v2387_v33 = vadd.f32 %v886_v22, %v853_v26  ;;  %964 = vadd.xlane.f32.xlu0 %v963_v27 }
 0x1d9   : > { %v966_v5 = vadd.f32 %v2387_v33, %v2385_v30 }
 0x1db   : > { %967 = vadd.xlane.f32.xlu1 %v966_v5 }
 0x22c   : > { %v923_v36 = vpop.xlane.xlu0 %922 }
 0x22d   : > { %v970_v6 = vmul.f32 0.00390625, %v923_v36 }
 0x22f   : > { %v2392_v37 = vsub.f32 %v2236_v21, %v970_v6  ;;  %v2395_v38 = vsub.f32 %v2240_v25, %v970_v6 }
 0x230   : > { %v926_v39 = vpop.xlane.xlu0 %925 }
 0x231   : > { %v971_v41 = vmul.f32 0.00390625, %v926_v39  ;;  %v1018_v42 = vmul.f32 %v2392_v37, %v2392_v37  ;;  %v1019_v43 = vmul.f32 %v2395_v38, %v2395_v38 }
 0x233   : > { %v2402_v48 = vsub.f32 %v2245_v31, %v971_v41  ;;  %v2405_v49 = vsub.f32 %v2248_v35, %v971_v41  ;;  %v1050_v50 = vadd.f32 %v1019_v43, %v1018_v42 }
 0x234   : > { %v929_v21 = vpop.xlane.xlu1 %928 }
 0x235   : > { %v972_v54 = vmul.f32 0.00390625, %v929_v21  ;;  %1051 = vadd.xlane.f32.xlu0 %v1050_v50  ;;  %v1020_v25 = vmul.f32 %v2402_v48, %v2402_v48  ;;  %v1021_v56 = vmul.f32 %v2405_v49, %v2405_v49 }
 0x237   : > { %v2412_v58 = vsub.f32 %v2256_v47, %v972_v54  ;;  %v2415_v59 = vsub.f32 %v2260_v51, %v972_v54  ;;  %v1053_v31 = vadd.f32 %v1021_v56, %v1020_v25 }
 0x238   : > { %v932_v62 = vpop.xlane.xlu1 %931 }
 0x239   : > { %v973_v35 = vmul.f32 0.00390625, %v932_v62  ;;  %1054 = vadd.xlane.f32.xlu1 %v1053_v31  ;;  %v1022_v63 = vmul.f32 %v2412_v58, %v2412_v58  ;;  %v1023_v0 = vmul.f32 %v2415_v59, %v2415_v59 }
 0x23b   : > { %v2422_v3 = vsub.f32 %v2265_v57, %v973_v35  ;;  %v2425_v8 = vsub.f32 %v2268_v61, %v973_v35  ;;  %v1056_v47 = vadd.f32 %v1023_v0, %v1022_v63 }
 0x23c   : > { %v935_v12 = vpop.xlane.xlu0 %934 }
 0x23d   : > { %v974_v51 = vmul.f32 0.00390625, %v935_v12  ;;  %1057 = vadd.xlane.f32.xlu0 %v1056_v47  ;;  %v1024_v13 = vmul.f32 %v2422_v3, %v2422_v3  ;;  %v1025_v17 = vmul.f32 %v2425_v8, %v2425_v8 }
 0x23f   : > { %v2432_v18 = vsub.f32 %v2275_v10, %v974_v51  ;;  %v2435_v19 = vsub.f32 %v2278_v14, %v974_v51  ;;  %v1059_v57 = vadd.f32 %v1025_v17, %v1024_v13 }
 0x240   : > { %v938_v20 = vpop.xlane.xlu1 %937 }
 0x241   : > { %v975_v61 = vmul.f32 0.00390625, %v938_v20  ;;  %1060 = vadd.xlane.f32.xlu1 %v1059_v57  ;;  %v1026_v22 = vmul.f32 %v2432_v18, %v2432_v18  ;;  %v1027_v26 = vmul.f32 %v2435_v19, %v2435_v19 }
 0x243   : > { %v2442_v27 = vsub.f32 %v2285_v24, %v975_v61  ;;  %v2445_v5 = vsub.f32 %v2288_v29, %v975_v61  ;;  %v1062_v10 = vadd.f32 %v1027_v26, %v1026_v22 }
 0x244   : > { %v941_v36 = vpop.xlane.xlu0 %940 }
 0x245   : > { %v976_v14 = vmul.f32 0.00390625, %v941_v36  ;;  %1063 = vadd.xlane.f32.xlu0 %v1062_v10  ;;  %v1028_v6 = vmul.f32 %v2442_v27, %v2442_v27  ;;  %v1029_v39 = vmul.f32 %v2445_v5, %v2445_v5 }
 0x247   : > { %v2452_v41 = vsub.f32 %v2295_v40, %v976_v14  ;;  %v2455_v42 = vsub.f32 %v2298_v44, %v976_v14  ;;  %v1065_v24 = vadd.f32 %v1029_v39, %v1028_v6 }
 0x248   : > { %v944_v43 = vpop.xlane.xlu1 %943 }
 0x249   : > { %v977_v29 = vmul.f32 0.00390625, %v944_v43  ;;  %1066 = vadd.xlane.f32.xlu1 %v1065_v24  ;;  %v1030_v50 = vmul.f32 %v2452_v41, %v2452_v41  ;;  %v1031_v21 = vmul.f32 %v2455_v42, %v2455_v42 }
 0x24b   : > { %v2462_v54 = vsub.f32 %v2305_v55, %v977_v29  ;;  %v2465_v25 = vsub.f32 %v2308_v60, %v977_v29  ;;  %v1068_v40 = vadd.f32 %v1031_v21, %v1030_v50 }
 0x24c   : > { %v947_v56 = vpop.xlane.xlu0 %946 }
 0x24d   : > { %v978_v44 = vmul.f32 0.00390625, %v947_v56  ;;  %1069 = vadd.xlane.f32.xlu0 %v1068_v40  ;;  %v1032_v31 = vmul.f32 %v2462_v54, %v2462_v54  ;;  %v1033_v62 = vmul.f32 %v2465_v25, %v2465_v25 }
 0x24f   : > { %v2472_v35 = vsub.f32 %v2315_v11, %v978_v44  ;;  %v2475_v63 = vsub.f32 %v2318_v16, %v978_v44  ;;  %v1071_v55 = vadd.f32 %v1033_v62, %v1032_v31 }
 0x250   : > { %v950_v0 = vpop.xlane.xlu1 %949 }
 0x251   : > { %v979_v60 = vmul.f32 0.00390625, %v950_v0  ;;  %1072 = vadd.xlane.f32.xlu1 %v1071_v55  ;;  %v1034_v47 = vmul.f32 %v2472_v35, %v2472_v35  ;;  %v1035_v12 = vmul.f32 %v2475_v63, %v2475_v63 }
 0x253   : > { %v2482_v51 = vsub.f32 %v2325_v28, %v979_v60  ;;  %v2485_v13 = vsub.f32 %v2328_v34, %v979_v60  ;;  %v1074_v11 = vadd.f32 %v1035_v12, %v1034_v47 }
 0x254   : > { %v953_v17 = vpop.xlane.xlu0 %952 }
 0x255   : > { %v980_v16 = vmul.f32 0.00390625, %v953_v17  ;;  %1075 = vadd.xlane.f32.xlu0 %v1074_v11  ;;  %v1036_v57 = vmul.f32 %v2482_v51, %v2482_v51  ;;  %v1037_v20 = vmul.f32 %v2485_v13, %v2485_v13 }
 0x257   : > { %v2492_v61 = vsub.f32 %v2335_v46, %v980_v16  ;;  %v2495_v22 = vsub.f32 %v2338_v52, %v980_v16  ;;  %v1077_v28 = vadd.f32 %v1037_v20, %v1036_v57 }
 0x258   : > { %v956_v26 = vpop.xlane.xlu1 %955 }
 0x259   : > { %v981_v34 = vmul.f32 0.00390625, %v956_v26  ;;  %1078 = vadd.xlane.f32.xlu1 %v1077_v28  ;;  %v1038_v10 = vmul.f32 %v2492_v61, %v2492_v61  ;;  %v1039_v36 = vmul.f32 %v2495_v22, %v2495_v22 }
 0x25b   : > { %v2502_v14 = vsub.f32 %v2345_v1, %v981_v34  ;;  %v2505_v6 = vsub.f32 %v2348_v9, %v981_v34  ;;  %v1080_v46 = vadd.f32 %v1039_v36, %v1038_v10 }
 0x25c   : > { %v959_v39 = vpop.xlane.xlu0 %958 }
 0x25d   : > { %v982_v52 = vmul.f32 0.00390625, %v959_v39  ;;  %1081 = vadd.xlane.f32.xlu0 %v1080_v46  ;;  %v1040_v24 = vmul.f32 %v2502_v14, %v2502_v14  ;;  %v1041_v43 = vmul.f32 %v2505_v6, %v2505_v6 }
 0x25f   : > { %v2512_v29 = vsub.f32 %v2355_v23, %v982_v52  ;;  %v2515_v50 = vsub.f32 %v2358_v32, %v982_v52  ;;  %v1083_v1 = vadd.f32 %v1041_v43, %v1040_v24  ;;  %v919_v52 = vld [vmem:[%s2756_s4] sm:$0x3] }
 0x260   : > { %v962_v21 = vpop.xlane.xlu1 %961 }
 0x261   : > { %v983_v9 = vmul.f32 0.00390625, %v962_v21  ;;  %1084 = vadd.xlane.f32.xlu1 %v1083_v1  ;;  %v1042_v40 = vmul.f32 %v2512_v29, %v2512_v29  ;;  %v1043_v56 = vmul.f32 %v2515_v50, %v2515_v50  ;;  %v920_v1 = vld [vmem:[%s2757_s5] sm:$0x3] }
 0x263   : > { %v2522_v44 = vsub.f32 %v2365_v45, %v983_v9  ;;  %v2525_v31 = vsub.f32 %v2368_v53, %v983_v9  ;;  %v1086_v23 = vadd.f32 %v1043_v56, %v1042_v40  ;;  %v2558_v9 = vrot.slane %v919_v52, %v2218_v2 }
 0x264   : > { %v965_v62 = vpop.xlane.xlu0 %964  ;;  %v2561_v40 = vrot.slane %v919_v52, %v2223_v4 }
 0x265   : > { %v984_v32 = vmul.f32 0.00390625, %v965_v62  ;;  %1087 = vadd.xlane.f32.xlu0 %v1086_v23  ;;  %v1044_v55 = vmul.f32 %v2522_v44, %v2522_v44  ;;  %v1045_v0 = vmul.f32 %v2525_v31, %v2525_v31  ;;  %v2564_v62 = vrot.slane %v920_v1, %v2218_v2 }
 0x267   : > { %v2532_v60 = vsub.f32 %v2375_v7, %v984_v32  ;;  %v2535_v47 = vsub.f32 %v2378_v15, %v984_v32  ;;  %v1089_v45 = vadd.f32 %v1045_v0, %v1044_v55  ;;  %v2567_v32 = vrot.slane %v920_v1, %v2223_v4 }
 0x268   : > { %v968_v12 = vpop.xlane.xlu1 %967 }
 0x269   : > { %v985_v53 = vmul.f32 0.00390625, %v968_v12  ;;  %1090 = vadd.xlane.f32.xlu1 %v1089_v45  ;;  %v1046_v11 = vmul.f32 %v2532_v60, %v2532_v60  ;;  %v1047_v17 = vmul.f32 %v2535_v47, %v2535_v47 }
 0x26b   : > { %v2542_v16 = vsub.f32 %v2385_v30, %v985_v53  ;;  %v2545_v57 = vsub.f32 %v2387_v33, %v985_v53  ;;  %v1092_v7 = vadd.f32 %v1047_v17, %v1046_v11 }
 0x26d   : > { %1093 = vadd.xlane.f32.xlu0 %v1092_v7  ;;  %v1048_v15 = vmul.f32 %v2542_v16, %v2542_v16  ;;  %v1049_v20 = vmul.f32 %v2545_v57, %v2545_v57 }
 0x26f   : > { %v1095_v28 = vadd.f32 %v1049_v20, %v1048_v15 }
 0x271   : > { %1096 = vadd.xlane.f32.xlu1 %v1095_v28 }
 0x2c2   : > { %v1052_v26 = vpop.xlane.xlu0 %1051 }
 0x2c3   : > { %v1098_v34 = vmul.f32 0.00390625, %v1052_v26 }
 0x2c5   : > { %v1114_v10 = vadd.f32 1e-12, %v1098_v34 }
 0x2c6   : > { %v1055_v36 = vpop.xlane.xlu1 %1054 }
 0x2c7   : > { %1705 = vrsqrt.f32 %v1114_v10  ;;  %v1099_v30 = vmul.f32 0.00390625, %v1055_v36 }
 0x2c9   : > { %v1115_v46 = vadd.f32 1e-12, %v1099_v30 }
 0x2ca   : > { %v1058_v39 = vpop.xlane.xlu0 %1057 }
 0x2cb   : > { %1707 = vrsqrt.f32 %v1115_v46  ;;  %v1100_v33 = vmul.f32 0.00390625, %v1058_v39 }
 0x2cd   : > { %v1116_v24 = vadd.f32 1e-12, %v1100_v33 }
 0x2ce   : > { %v1061_v43 = vpop.xlane.xlu1 %1060 }
 0x2cf   : > { %1709 = vrsqrt.f32 %v1116_v24  ;;  %v1101_v21 = vmul.f32 0.00390625, %v1061_v43 }
 0x2d1   : > { %v1706_v56 = vpop.eup %1705  ;;  %v1117_v23 = vadd.f32 1e-12, %v1101_v21 }
 0x2d2   : > { %v1146_v55 = vmul.f32 %v1706_v56, %v2392_v37  ;;  %v1147_v0 = vmul.f32 %v1706_v56, %v2395_v38  ;;  %v1064_v45 = vpop.xlane.xlu0 %1063 }
 0x2d3   : > { %1711 = vrsqrt.f32 %v1117_v23  ;;  %v1102_v12 = vmul.f32 0.00390625, %v1064_v45 }
 0x2d4   : > { %v1189_v53 = vmul.f32 %v2558_v9, %v1146_v55  ;;  %v1190_v11 = vmul.f32 %v2561_v40, %v1147_v0 }
 0x2d5   : > { %v1708_v17 = vpop.eup %1707  ;;  %v1118_v7 = vadd.f32 1e-12, %v1102_v12 }
 0x2d6   : > { %v1232_v2 = vadd.f32 %v2564_v62, %v1189_v53  ;;  %v1233_v15 = vadd.f32 %v2567_v32, %v1190_v11  ;;  %v1148_v4 = vmul.f32 %v1708_v17, %v2402_v48  ;;  %v1149_v37 = vmul.f32 %v1708_v17, %v2405_v49  ;;  %v1067_v20 = vpop.xlane.xlu1 %1066 }
 0x2d7   : > { %1713 = vrsqrt.f32 %v1118_v7  ;;  %v1103_v38 = vmul.f32 0.00390625, %v1067_v20 }
 0x2d8   : > { %1264 = vst [vmem:[%s2579_s12] sm:$0xff] %v1232_v2  ;;  %1265 = vst [vmem:[%s2579_s12 + $0x8] sm:$0xff] %v1233_v15  ;;  %v1191_v28 = vmul.f32 %v2558_v9, %v1148_v4  ;;  %v1192_v26 = vmul.f32 %v2561_v40, %v1149_v37 }
 0x2d9   : > { %v1710_v34 = vpop.eup %1709  ;;  %v1119_v48 = vadd.f32 1e-12, %v1103_v38 }
 0x2da   : > { %v1234_v49 = vadd.f32 %v2564_v62, %v1191_v28  ;;  %v1235_v10 = vadd.f32 %v2567_v32, %v1192_v26  ;;  %v1150_v36 = vmul.f32 %v1710_v34, %v2412_v58  ;;  %v1151_v30 = vmul.f32 %v1710_v34, %v2415_v59  ;;  %v1070_v46 = vpop.xlane.xlu0 %1069 }
 0x2db   : > { %1715 = vrsqrt.f32 %v1119_v48  ;;  %v1104_v39 = vmul.f32 0.00390625, %v1070_v46 }
 0x2dc   : > { %1266 = vst [vmem:[%s2579_s12 + $0x10] sm:$0xff] %v1234_v49  ;;  %1267 = vst [vmem:[%s2579_s12 + $0x18] sm:$0xff] %v1235_v10  ;;  %v1193_v33 = vmul.f32 %v2558_v9, %v1150_v36  ;;  %v1194_v52 = vmul.f32 %v2561_v40, %v1151_v30 }
 0x2dd   : > { %v1712_v24 = vpop.eup %1711  ;;  %v1120_v43 = vadd.f32 1e-12, %v1104_v39 }
 0x2de   : > { %v1236_v1 = vadd.f32 %v2564_v62, %v1193_v33  ;;  %v1237_v21 = vadd.f32 %v2567_v32, %v1194_v52  ;;  %v1152_v58 = vmul.f32 %v1712_v24, %v2422_v3  ;;  %v1153_v59 = vmul.f32 %v1712_v24, %v2425_v8  ;;  %v1073_v56 = vpop.xlane.xlu1 %1072 }
 0x2df   : > { %1717 = vrsqrt.f32 %v1120_v43  ;;  %v1105_v23 = vmul.f32 0.00390625, %v1073_v56 }
 0x2e0   : > { %1268 = vst [vmem:[%s2579_s12 + $0x20] sm:$0xff] %v1236_v1  ;;  %1269 = vst [vmem:[%s2579_s12 + $0x28] sm:$0xff] %v1237_v21  ;;  %v1195_v55 = vmul.f32 %v2558_v9, %v1152_v58  ;;  %v1196_v0 = vmul.f32 %v2561_v40, %v1153_v59 }
 0x2e1   : > { %v1714_v45 = vpop.eup %1713  ;;  %v1121_v12 = vadd.f32 1e-12, %v1105_v23 }
 0x2e2   : > { %v1238_v53 = vadd.f32 %v2564_v62, %v1195_v55  ;;  %v1239_v11 = vadd.f32 %v2567_v32, %v1196_v0  ;;  %v1154_v3 = vmul.f32 %v1714_v45, %v2432_v18  ;;  %v1155_v8 = vmul.f32 %v1714_v45, %v2435_v19  ;;  %v1076_v17 = vpop.xlane.xlu0 %1075 }
 0x2e3   : > { %1719 = vrsqrt.f32 %v1121_v12  ;;  %v1106_v7 = vmul.f32 0.00390625, %v1076_v17 }
 0x2e4   : > { %1270 = vst [vmem:[%s2579_s12 + $0x30] sm:$0xff] %v1238_v53  ;;  %1271 = vst [vmem:[%s2579_s12 + $0x38] sm:$0xff] %v1239_v11  ;;  %v1197_v2 = vmul.f32 %v2558_v9, %v1154_v3  ;;  %v1198_v15 = vmul.f32 %v2561_v40, %v1155_v8 }
 0x2e5   : > { %v1716_v4 = vpop.eup %1715  ;;  %v1122_v37 = vadd.f32 1e-12, %v1106_v7 }
 0x2e6   : > { %v1240_v20 = vadd.f32 %v2564_v62, %v1197_v2  ;;  %v1241_v38 = vadd.f32 %v2567_v32, %v1198_v15  ;;  %v1156_v18 = vmul.f32 %v1716_v4, %v2442_v27  ;;  %v1157_v19 = vmul.f32 %v1716_v4, %v2445_v5  ;;  %v1079_v28 = vpop.xlane.xlu1 %1078 }
 0x2e7   : > { %1721 = vrsqrt.f32 %v1122_v37  ;;  %v1107_v26 = vmul.f32 0.00390625, %v1079_v28 }
 0x2e8   : > { %1272 = vst [vmem:[%s2579_s12 + $0x40] sm:$0xff] %v1240_v20  ;;  %1273 = vst [vmem:[%s2579_s12 + $0x48] sm:$0xff] %v1241_v38  ;;  %v1199_v34 = vmul.f32 %v2558_v9, %v1156_v18  ;;  %v1200_v48 = vmul.f32 %v2561_v40, %v1157_v19 }
 0x2e9   : > { %v1718_v49 = vpop.eup %1717  ;;  %v1123_v10 = vadd.f32 1e-12, %v1107_v26 }
 0x2ea   : > { %v1242_v36 = vadd.f32 %v2564_v62, %v1199_v34  ;;  %v1243_v30 = vadd.f32 %v2567_v32, %v1200_v48  ;;  %v1158_v27 = vmul.f32 %v1718_v49, %v2452_v41  ;;  %v1159_v5 = vmul.f32 %v1718_v49, %v2455_v42  ;;  %v1082_v46 = vpop.xlane.xlu0 %1081 }
 0x2eb   : > { %1723 = vrsqrt.f32 %v1123_v10  ;;  %v1108_v39 = vmul.f32 0.00390625, %v1082_v46 }
 0x2ec   : > { %1274 = vst [vmem:[%s2579_s12 + $0x50] sm:$0xff] %v1242_v36  ;;  %1275 = vst [vmem:[%s2579_s12 + $0x58] sm:$0xff] %v1243_v30  ;;  %v1201_v33 = vmul.f32 %v2558_v9, %v1158_v27  ;;  %v1202_v52 = vmul.f32 %v2561_v40, %v1159_v5 }
 0x2ed   : > { %v1720_v24 = vpop.eup %1719  ;;  %v1124_v43 = vadd.f32 1e-12, %v1108_v39 }
 0x2ee   : > { %v1244_v1 = vadd.f32 %v2564_v62, %v1201_v33  ;;  %v1245_v21 = vadd.f32 %v2567_v32, %v1202_v52  ;;  %v1160_v41 = vmul.f32 %v1720_v24, %v2462_v54  ;;  %v1161_v42 = vmul.f32 %v1720_v24, %v2465_v25  ;;  %v1085_v58 = vpop.xlane.xlu1 %1084 }
 0x2ef   : > { %1725 = vrsqrt.f32 %v1124_v43  ;;  %v1109_v59 = vmul.f32 0.00390625, %v1085_v58 }
 0x2f0   : > { %1276 = vst [vmem:[%s2579_s12 + $0x60] sm:$0xff] %v1244_v1  ;;  %1277 = vst [vmem:[%s2579_s12 + $0x68] sm:$0xff] %v1245_v21  ;;  %v1203_v56 = vmul.f32 %v2558_v9, %v1160_v41  ;;  %v1204_v23 = vmul.f32 %v2561_v40, %v1161_v42 }
 0x2f1   : > { %v1722_v55 = vpop.eup %1721  ;;  %v1125_v0 = vadd.f32 1e-12, %v1109_v59 }
 0x2f2   : > { %v1246_v45 = vadd.f32 %v2564_v62, %v1203_v56  ;;  %v1247_v12 = vadd.f32 %v2567_v32, %v1204_v23  ;;  %v1162_v54 = vmul.f32 %v1722_v55, %v2472_v35  ;;  %v1163_v25 = vmul.f32 %v1722_v55, %v2475_v63  ;;  %v1088_v53 = vpop.xlane.xlu0 %1087 }
 0x2f3   : > { %1727 = vrsqrt.f32 %v1125_v0  ;;  %v1110_v11 = vmul.f32 0.00390625, %v1088_v53 }
 0x2f4   : > { %1278 = vst [vmem:[%s2579_s12 + $0x70] sm:$0xff] %v1246_v45  ;;  %1279 = vst [vmem:[%s2579_s12 + $0x78] sm:$0xff] %v1247_v12  ;;  %v1205_v3 = vmul.f32 %v2558_v9, %v1162_v54  ;;  %v1206_v8 = vmul.f32 %v2561_v40, %v1163_v25 }
 0x2f5   : > { %v1724_v17 = vpop.eup %1723  ;;  %v1126_v7 = vadd.f32 1e-12, %v1110_v11 }
 0x2f6   : > { %v1248_v2 = vadd.f32 %v2564_v62, %v1205_v3  ;;  %v1249_v15 = vadd.f32 %v2567_v32, %v1206_v8  ;;  %v1164_v35 = vmul.f32 %v1724_v17, %v2482_v51  ;;  %v1165_v63 = vmul.f32 %v1724_v17, %v2485_v13  ;;  %v1091_v4 = vpop.xlane.xlu1 %1090 }
 0x2f7   : > { %1729 = vrsqrt.f32 %v1126_v7  ;;  %v1111_v37 = vmul.f32 0.00390625, %v1091_v4 }
 0x2f8   : > { %1280 = vst [vmem:[%s2579_s12 + $0x80] sm:$0xff] %v1248_v2  ;;  %1281 = vst [vmem:[%s2579_s12 + $0x88] sm:$0xff] %v1249_v15  ;;  %v1207_v20 = vmul.f32 %v2558_v9, %v1164_v35  ;;  %v1208_v38 = vmul.f32 %v2561_v40, %v1165_v63 }
 0x2f9   : > { %v1726_v18 = vpop.eup %1725  ;;  %v1127_v19 = vadd.f32 1e-12, %v1111_v37 }
 0x2fa   : > { %v1250_v28 = vadd.f32 %v2564_v62, %v1207_v20  ;;  %v1251_v26 = vadd.f32 %v2567_v32, %v1208_v38  ;;  %v1166_v51 = vmul.f32 %v1726_v18, %v2492_v61  ;;  %v1167_v13 = vmul.f32 %v1726_v18, %v2495_v22  ;;  %v1094_v34 = vpop.xlane.xlu0 %1093 }
 0x2fb   : > { %1731 = vrsqrt.f32 %v1127_v19  ;;  %v1112_v48 = vmul.f32 0.00390625, %v1094_v34 }
 0x2fc   : > { %1282 = vst [vmem:[%s2579_s12 + $0x90] sm:$0xff] %v1250_v28  ;;  %1283 = vst [vmem:[%s2579_s12 + $0x98] sm:$0xff] %v1251_v26  ;;  %v1209_v49 = vmul.f32 %v2558_v9, %v1166_v51  ;;  %v1210_v10 = vmul.f32 %v2561_v40, %v1167_v13 }
 0x2fd   : > { %v1728_v36 = vpop.eup %1727  ;;  %v1128_v30 = vadd.f32 1e-12, %v1112_v48 }
 0x2fe   : > { %v1252_v27 = vadd.f32 %v2564_v62, %v1209_v49  ;;  %v1253_v5 = vadd.f32 %v2567_v32, %v1210_v10  ;;  %v1168_v61 = vmul.f32 %v1728_v36, %v2502_v14  ;;  %v1169_v22 = vmul.f32 %v1728_v36, %v2505_v6  ;;  %v1097_v46 = vpop.xlane.xlu1 %1096 }
 0x2ff   : > { %1733 = vrsqrt.f32 %v1128_v30  ;;  %v1113_v39 = vmul.f32 0.00390625, %v1097_v46 }
 0x300   : > { %1284 = vst [vmem:[%s2579_s12 + $0xa0] sm:$0xff] %v1252_v27  ;;  %1285 = vst [vmem:[%s2579_s12 + $0xa8] sm:$0xff] %v1253_v5  ;;  %v1211_v33 = vmul.f32 %v2558_v9, %v1168_v61  ;;  %v1212_v52 = vmul.f32 %v2561_v40, %v1169_v22 }
 0x301   : > { %v1730_v24 = vpop.eup %1729  ;;  %v1129_v43 = vadd.f32 1e-12, %v1113_v39 }
 0x302   : > { %v1254_v1 = vadd.f32 %v2564_v62, %v1211_v33  ;;  %v1255_v14 = vadd.f32 %v2567_v32, %v1212_v52  ;;  %v1170_v6 = vmul.f32 %v1730_v24, %v2512_v29  ;;  %v1171_v21 = vmul.f32 %v1730_v24, %v2515_v50 }
 0x303   : > { %1735 = vrsqrt.f32 %v1129_v43 }
 0x304   : > { %1286 = vst [vmem:[%s2579_s12 + $0xb0] sm:$0xff] %v1254_v1  ;;  %1287 = vst [vmem:[%s2579_s12 + $0xb8] sm:$0xff] %v1255_v14  ;;  %v1213_v41 = vmul.f32 %v2558_v9, %v1170_v6  ;;  %v1214_v42 = vmul.f32 %v2561_v40, %v1171_v21 }
 0x305   : > { %v1732_v58 = vpop.eup %1731 }
 0x306   : > { %v1256_v59 = vadd.f32 %v2564_v62, %v1213_v41  ;;  %v1257_v56 = vadd.f32 %v2567_v32, %v1214_v42  ;;  %v1172_v23 = vmul.f32 %v1732_v58, %v2522_v44  ;;  %v1173_v29 = vmul.f32 %v1732_v58, %v2525_v31 }
 0x308   : > { %1288 = vst [vmem:[%s2579_s12 + $0xc0] sm:$0xff] %v1256_v59  ;;  %1289 = vst [vmem:[%s2579_s12 + $0xc8] sm:$0xff] %v1257_v56  ;;  %v1215_v50 = vmul.f32 %v2558_v9, %v1172_v23  ;;  %v1216_v55 = vmul.f32 %v2561_v40, %v1173_v29 }
 0x309   : > { %v1734_v0 = vpop.eup %1733 }
 0x30a   : > { %v1258_v45 = vadd.f32 %v2564_v62, %v1215_v50  ;;  %v1259_v12 = vadd.f32 %v2567_v32, %v1216_v55  ;;  %v1174_v54 = vmul.f32 %v1734_v0, %v2532_v60  ;;  %v1175_v44 = vmul.f32 %v1734_v0, %v2535_v47 }
 0x30c   : > { %1290 = vst [vmem:[%s2579_s12 + $0xd0] sm:$0xff] %v1258_v45  ;;  %1291 = vst [vmem:[%s2579_s12 + $0xd8] sm:$0xff] %v1259_v12  ;;  %v1217_v31 = vmul.f32 %v2558_v9, %v1174_v54  ;;  %v1218_v25 = vmul.f32 %v2561_v40, %v1175_v44 }
 0x30d   : > { %v1736_v53 = vpop.eup %1735 }
 0x30e   : > { %v1260_v11 = vadd.f32 %v2564_v62, %v1217_v31  ;;  %v1261_v3 = vadd.f32 %v2567_v32, %v1218_v25  ;;  %v1176_v8 = vmul.f32 %v1736_v53, %v2542_v16  ;;  %v1177_v60 = vmul.f32 %v1736_v53, %v2545_v57 }
 0x310   : > { %1292 = vst [vmem:[%s2579_s12 + $0xe0] sm:$0xff] %v1260_v11  ;;  %1293 = vst [vmem:[%s2579_s12 + $0xe8] sm:$0xff] %v1261_v3  ;;  %v1219_v47 = vmul.f32 %v2558_v9, %v1176_v8  ;;  %v1220_v17 = vmul.f32 %v2561_v40, %v1177_v60 }
 0x312   : > { %v1262_v16 = vadd.f32 %v2564_v62, %v1219_v47  ;;  %v1263_v57 = vadd.f32 %v2567_v32, %v1220_v17 }
 0x314   : > { %1294 = vst [vmem:[%s2579_s12 + $0xf0] sm:$0xff] %v1262_v16  ;;  %1295 = vst [vmem:[%s2579_s12 + $0xf8] sm:$0xff] %v1263_v57 }
 0x315   : > { %1838 = shalt.err (!%p1835_p6)
}
 0x316   : > { %s1839_s13 = scalar_lea.hbm %s2702_s20, 4096  ;;  %s1843_s7 = scalar_lea.hbm %s2758_s6, 8192 }
 0x317   : > { %p1840_p8 = scmp.ne.s32.totalorder %s2702_s20, %s1839_s13  ;;  %p1844_p4 = scmp.lt.u32.totalorder %s2702_s20, %s2758_s6 }
 0x318   : > { %p1845_p11 = scmp.lt.u32.totalorder %s1843_s7, %s1839_s13  ;;  %p1847_p3 = scmp.lt.u32.totalorder %s1839_s13, %s2702_s20 }
 0x319   : > { %p1841_p10 = pnand %p1840_p8, %p2040_p12 }
 0x31a   : > { %p1846_p13 = por %p1845_p11, %p1844_p4 }
 0x31b   : > { %p1842_p0 = pneg %p1841_p10 }
 0x31c   : > { %p1848_p7 = por %p1847_p3, %p1846_p13 }
 0x31e   : > { %p1849_p9 = pnand %p1848_p7, %p1842_p0 }
 0x320   : > { %1852 = shalt.err (!%p1849_p9)
}
 0x321   : > { %s1909_s18 = smov 256   ;;  %s1910_s30 = smov 16  }
 0x322   : > { %1645 = dma.vmem_to_hbm [thread:$0]  (%p2040_p12), %s2704_s10, 4096, %s2702_s20, %s1297_s25, %s1909_s18, %s1909_s18, %s1910_s30  }
 0x323 PF: > { %s1326_s12 = sand.u32 1, %s1887_s21   ;;  %p2784_p1 = scmp.ne.s32.totalorder %s2769_s28, 0 }
 0x324   : > { %p2785_p5 = scmp.ge.s32.totalorder %s1899_s24, 2  ;;  %s1327_s17 = scalar_lea.sflag [#allocation4], %s1326_s12 }
 0x326   : > { %p1659_p2 = pnand %p2785_p5, %p2784_p1 }
 0x328   : > { %1882 = dma.done.wait (!%p1659_p2), %s1327_s17, 4096  }
 0x329   : > { %1884 = vsyncadd (!%p1659_p2), %s1327_s17, 4294963200  ;;  %s2786_s23 = sld [smem:[#allocation13_spill]]  ;;  %s2787_s15 = sld [smem:[#allocation14_spill]] }
 0x32a   : > { %p22_p6 = scmp.ge.s32.totalorder %s2002_s9, 4   ;;  %s2788_s21 = smov %s1891_s22 }
 0x32b   : > { %s2791_s24 = smov %s2002_s9 }
 0x32c   :  { %24 = sbr.rel (!%p22_p6) target bundleno = 10 (0xa), region = 106 }
 0x32f   : > { %s2789_s22 = smov %s2786_s23  ;;  %s2790_s23 = smov %s2787_s15 }
 0x333   :  { %1332 = vsyncpa [#allocation3], 1 }
 0x334   :  { %1334 = vsyncpa [#allocation3 + $0x1], 1 }
 0x335   :  { %1335 = vsyncpa [#allocation6], 1 }
 0x336   :  { %1337 = vsyncpa [#allocation6 + $0x1], 1 }
 0x337   :  { %1338 = vsyncpa [#allocation4], 1 }
 0x338   :  { %1340 = vsyncpa [#allocation4 + $0x1], 1 }

</bundles_post_ra>
